<compile_context>
chip_gen: v7x
topology: tpu7x:2x2x1
jax: 0.10.0
libtpu: 0.0.40
codegen_flags: <defaults>
</compile_context>

<pallas_src>
import math

import jax
import jax.numpy as jnp
from jax.experimental import pallas as pl
from jax.experimental.pallas import tpu as pltpu

EPS = 1e-5


def make_resblock_kernel(H, WCp):
    def kernel(x_ref, w1h_ref, w1l_ref, s1_ref, t1_ref,
               w2h_ref, w2l_ref, s2_ref, t2_ref, out_ref, pad_ref):
        # x_ref  : (1, H, WCp)    unpadded NHW(Cp) slab (lane dim multiple of 128)
        # w*h/w*l: (3, WCp, WCp)  bf16 hi/lo block-tridiagonal weights, one per ky
        # s*/t*  : (1, WCp)       folded BN scale / shift (zero on padded channels)
        # pad_ref: VMEM scratch (H+2, WCp) row-halo'd slab reused by both convs
        x = x_ref[0]                                   # (H, WCp) f32

        # Zero only the two halo rows; the interior is fully overwritten below.
        # Done every step so correctness does not depend on grid->core sharding.
        zrow = jnp.zeros((1, WCp), jnp.float32)
        pad_ref[pl.ds(0, 1), :] = zrow
        pad_ref[pl.ds(H + 1, 1), :] = zrow

        def conv3x3(wh_ref, wl_ref):
            # 3 lane-aligned dots (one per ky tap); kx shift + width halo live in
            # the block-tridiagonal weights.  bf16 hi/lo split recovers ~f32
            # accuracy with f32 accumulation (no HIGHEST f32 MXU emulation).
            acc = jnp.zeros((H, WCp), jnp.float32)
            for dy in range(3):
                a = pad_ref[pl.ds(dy, H), :]                       # (H, WCp) f32
                a_hi = a.astype(jnp.bfloat16)
                a_lo = (a - a_hi.astype(jnp.float32)).astype(jnp.bfloat16)
                wh = wh_ref[dy]
                wl = wl_ref[dy]
                acc = acc + jnp.dot(a_hi, wh, preferred_element_type=jnp.float32)
                acc = acc + jnp.dot(a_lo, wh, preferred_element_type=jnp.float32)
                acc = acc + jnp.dot(a_hi, wl, preferred_element_type=jnp.float32)
            return acc

        # ---- conv1 (3x3, pad=1) + folded bn1 + relu ----
        pad_ref[pl.ds(1, H), :] = x
        mid = jnp.maximum(conv3x3(w1h_ref, w1l_ref) * s1_ref[...] + t1_ref[...], 0.0)

        # ---- conv2 (3x3, pad=1) + folded bn2 + residual + relu ----
        pad_ref[pl.ds(1, H), :] = mid
        out = conv3x3(w2h_ref, w2l_ref) * s2_ref[...] + t2_ref[...] + x
        out_ref[0] = jnp.maximum(out, 0.0)

    return kernel


# ---------------- glue (plain JAX): parameter folding / layout ----------------

def _tridiag_taps(w, W, C, Cp):
    """w: (Cout, Cin, 3, 3) torch layout -> (3, W*Cp, W*Cp) per-ky matrices.

    M[dy][win*Cp + cin, wout*Cp + cout] = w[cout, cin, dy, win - wout + 1]
    Entries with win outside [0, W) are simply absent -> the width zero-halo is
    handled by the weight structure (no lane padding needed in the slab).
    """
    taps = []
    for dy in range(3):
        m = jnp.zeros((W * Cp, W * Cp), jnp.float32)
        for dx in range(3):
            shift = jnp.eye(W, W, k=1 - dx, dtype=jnp.float32)   # win = wout + dx - 1
            blk = jnp.zeros((Cp, Cp), jnp.float32).at[:C, :C].set(w[:, :, dy, dx].T)
            m = m + jnp.kron(shift, blk)
        taps.append(m)
    return jnp.stack(taps, axis=0)


def _split_bf16(m):
    hi = m.astype(jnp.bfloat16)
    lo = (m - hi.astype(jnp.float32)).astype(jnp.bfloat16)
    return hi, lo


def _fold_bn(conv_b, gamma, beta, mean, var, W, C, Cp):
    scale = gamma / jnp.sqrt(var + EPS)            # (C,)
    shift = beta + scale * (conv_b - mean)         # (C,)
    scale_p = jnp.zeros((Cp,), jnp.float32).at[:C].set(scale)
    shift_p = jnp.zeros((Cp,), jnp.float32).at[:C].set(shift)
    return jnp.tile(scale_p, W)[None, :], jnp.tile(shift_p, W)[None, :]


def residual_block_pallas(x, p):
    B, C, H, W = x.shape
    # Pad channels so the fused (W, Cp) lane dim is a multiple of 128 (unmasked
    # vector stores).  For C=4, W=16 this gives Cp=8, WCp=128.
    k = 128 // math.gcd(W, 128)
    Cp = ((C + k - 1) // k) * k
    WCp = W * Cp

    x_nhwc = jnp.transpose(x, (0, 2, 3, 1))                                 # (B,H,W,C)
    x_fused = jnp.pad(x_nhwc, ((0, 0), (0, 0), (0, 0), (0, Cp - C)))
    x_fused = x_fused.reshape(B, H, WCp)        # spatial padding happens in-kernel

    w1_hi, w1_lo = _split_bf16(_tridiag_taps(p["w1"], W, C, Cp))
    w2_hi, w2_lo = _split_bf16(_tridiag_taps(p["w2"], W, C, Cp))
    s1, t1 = _fold_bn(p["b1"], p["g1"], p["be1"], p["m1"], p["v1"], W, C, Cp)
    s2, t2 = _fold_bn(p["b2"], p["g2"], p["be2"], p["m2"], p["v2"], W, C, Cp)

    kernel = make_resblock_kernel(H, WCp)
    out = pl.pallas_call(
        kernel,
        out_shape=jax.ShapeDtypeStruct((B, H, WCp), jnp.float32),
        grid_spec=pltpu.PrefetchScalarGridSpec(
            num_scalar_prefetch=0,
            grid=(B,),
            in_specs=[
                pl.BlockSpec((1, H, WCp), lambda b: (b, 0, 0)),      # x
                pl.BlockSpec((3, WCp, WCp), lambda b: (0, 0, 0)),    # w1 hi
                pl.BlockSpec((3, WCp, WCp), lambda b: (0, 0, 0)),    # w1 lo
                pl.BlockSpec((1, WCp), lambda b: (0, 0)),            # s1
                pl.BlockSpec((1, WCp), lambda b: (0, 0)),            # t1
                pl.BlockSpec((3, WCp, WCp), lambda b: (0, 0, 0)),    # w2 hi
                pl.BlockSpec((3, WCp, WCp), lambda b: (0, 0, 0)),    # w2 lo
                pl.BlockSpec((1, WCp), lambda b: (0, 0)),            # s2
                pl.BlockSpec((1, WCp), lambda b: (0, 0)),            # t2
            ],
            out_specs=pl.BlockSpec((1, H, WCp), lambda b: (b, 0, 0)),
            scratch_shapes=[pltpu.VMEM((H + 2, WCp), jnp.float32)],
        ),
        compiler_params=pltpu.CompilerParams(
            dimension_semantics=("parallel",)),
    )(x_fused, w1_hi, w1_lo, s1, t1, w2_hi, w2_lo, s2, t2)

    out = out.reshape(B, H, W, Cp)[..., :C]
    return jnp.transpose(out, (0, 3, 1, 2))


# ---------------- pure-JAX reference (for correctness check) ----------------

def residual_block_ref(x, p):
    def conv(h, w, b):
        y = jax.lax.conv_general_dilated(
            h, w, window_strides=(1, 1), padding=((1, 1), (1, 1)),
            dimension_numbers=("NCHW", "OIHW", "NCHW"),
            precision=jax.lax.Precision.HIGHEST)
        return y + b[None, :, None, None]

    def bn(h, g, be, m, v):
        return (g[None, :, None, None] * (h - m[None, :, None, None])
                / jnp.sqrt(v[None, :, None, None] + EPS)
                + be[None, :, None, None])

    out = jax.nn.relu(bn(conv(x, p["w1"], p["b1"]),
                         p["g1"], p["be1"], p["m1"], p["v1"]))
    out = bn(conv(out, p["w2"], p["b2"]),
             p["g2"], p["be2"], p["m2"], p["v2"]) + x
    return jax.nn.relu(out)


def init_params(key, C):
    ks = jax.random.split(key, 14)
    n = lambda k, s: jax.random.normal(k, s, jnp.float32)
    return dict(
        # conv1 / bn1
        w1=0.1 * n(ks[0], (C, C, 3, 3)),
        b1=0.1 * n(ks[1], (C,)),
        g1=1.0 + 0.1 * n(ks[2], (C,)),
        be1=0.1 * n(ks[3], (C,)),
        m1=0.05 * n(ks[4], (C,)),
        v1=0.5 + 0.5 * jnp.abs(n(ks[5], (C,))),
        # conv2 / bn2
        w2=0.1 * n(ks[6], (C, C, 3, 3)),
        b2=0.1 * n(ks[7], (C,)),
        g2=1.0 + 0.1 * n(ks[8], (C,)),
        be2=0.1 * n(ks[9], (C,)),
        m2=0.05 * n(ks[10], (C,)),
        v2=0.5 + 0.5 * jnp.abs(n(ks[11], (C,))),
    )


if __name__ == "__main__":
    key = jax.random.PRNGKey(0)
    kx, kp = jax.random.split(key)
    B, C, H, W = 2, 4, 16, 16
    x = jax.random.normal(kx, (B, C, H, W), jnp.float32)
    params = init_params(kp, C)

    out = jax.block_until_ready(residual_block_pallas(x, params))
    ref = jax.block_until_ready(residual_block_ref(x, params))

    assert out.shape == (B, C, H, W), out.shape
    err = float(jnp.max(jnp.abs(out - ref)))
    assert err < 1e-3, f"max abs error vs reference: {err}"
    print("KERNEL_OK")
</pallas_src>

<mosaic_0001>
module attributes {stable_mosaic.version = 11 : i64} {
  func.func @kernel(%arg0: i32, %arg1: memref<1x16x128xf32, #tpu.memory_space<vmem>>, %arg2: memref<3x128x128xbf16, #tpu.memory_space<vmem>>, %arg3: memref<3x128x128xbf16, #tpu.memory_space<vmem>>, %arg4: memref<1x128xf32, #tpu.memory_space<vmem>>, %arg5: memref<1x128xf32, #tpu.memory_space<vmem>>, %arg6: memref<3x128x128xbf16, #tpu.memory_space<vmem>>, %arg7: memref<3x128x128xbf16, #tpu.memory_space<vmem>>, %arg8: memref<1x128xf32, #tpu.memory_space<vmem>>, %arg9: memref<1x128xf32, #tpu.memory_space<vmem>>, %arg10: memref<1x16x128xf32, #tpu.memory_space<vmem>>, %arg11: memref<18x128xf32, #tpu.memory_space<vmem>>) attributes {dimension_semantics = [#tpu.dimension_semantics<parallel>], iteration_bounds = array<i64: 2>, scalar_prefetch = 0 : i64, scratch_operands = 1 : i64, tpu.core_type = #tpu.core_type<tc>, window_params = [{transform_indices = @transform_0, window_bounds = array<i64: 1, 16, 128>}, {pipeline_mode = #tpu.pipeline_mode<synchronous>, transform_indices = @transform_1, window_bounds = array<i64: 3, 128, 128>}, {pipeline_mode = #tpu.pipeline_mode<synchronous>, transform_indices = @transform_2, window_bounds = array<i64: 3, 128, 128>}, {pipeline_mode = #tpu.pipeline_mode<synchronous>, transform_indices = @transform_3, window_bounds = array<i64: 1, 128>}, {pipeline_mode = #tpu.pipeline_mode<synchronous>, transform_indices = @transform_4, window_bounds = array<i64: 1, 128>}, {pipeline_mode = #tpu.pipeline_mode<synchronous>, transform_indices = @transform_5, window_bounds = array<i64: 3, 128, 128>}, {pipeline_mode = #tpu.pipeline_mode<synchronous>, transform_indices = @transform_6, window_bounds = array<i64: 3, 128, 128>}, {pipeline_mode = #tpu.pipeline_mode<synchronous>, transform_indices = @transform_7, window_bounds = array<i64: 1, 128>}, {pipeline_mode = #tpu.pipeline_mode<synchronous>, transform_indices = @transform_8, window_bounds = array<i64: 1, 128>}, {transform_indices = @transform_9, window_bounds = array<i64: 1, 16, 128>}]} {
    %c0 = arith.constant 0 : index
    %c0_0 = arith.constant 0 : index
    %c0_1 = arith.constant 0 : index
    %0 = vector.load %arg1[%c0, %c0_0, %c0_1] : memref<1x16x128xf32, #tpu.memory_space<vmem>>, vector<1x16x128xf32>
    %1 = vector.shape_cast %0 : vector<1x16x128xf32> to vector<16x128xf32>
    %cst = arith.constant 0.000000e+00 : f32
    %2 = vector.broadcast %cst : f32 to vector<1x128xf32>
    %c0_2 = arith.constant 0 : index
    %c0_3 = arith.constant 0 : index
    %3 = vector.load %arg11[%c0_2, %c0_3] : memref<18x128xf32, #tpu.memory_space<vmem>>, vector<1x128xf32>
    tpu.vector_store %arg11[%c0_2, %c0_3], %2 {strides = array<i32>} : memref<18x128xf32, #tpu.memory_space<vmem>>, vector<1x128xf32>,
    %c17 = arith.constant 17 : index
    %c0_4 = arith.constant 0 : index
    %4 = vector.load %arg11[%c17, %c0_4] : memref<18x128xf32, #tpu.memory_space<vmem>>, vector<1x128xf32>
    tpu.vector_store %arg11[%c17, %c0_4], %2 {strides = array<i32>} : memref<18x128xf32, #tpu.memory_space<vmem>>, vector<1x128xf32>,
    %c1 = arith.constant 1 : index
    %c0_5 = arith.constant 0 : index
    %5 = vector.load %arg11[%c1, %c0_5] : memref<18x128xf32, #tpu.memory_space<vmem>>, vector<16x128xf32>
    tpu.vector_store %arg11[%c1, %c0_5], %1 {strides = array<i32>} : memref<18x128xf32, #tpu.memory_space<vmem>>, vector<16x128xf32>,
    %cst_6 = arith.constant 0.000000e+00 : f32
    %6 = vector.broadcast %cst_6 : f32 to vector<16x128xf32>
    %c0_7 = arith.constant 0 : index
    %c0_8 = arith.constant 0 : index
    %7 = vector.load %arg11[%c0_7, %c0_8] : memref<18x128xf32, #tpu.memory_space<vmem>>, vector<16x128xf32>
    %8 = arith.truncf %7 : vector<16x128xf32> to vector<16x128xbf16>
    %9 = arith.extf %8 : vector<16x128xbf16> to vector<16x128xf32>
    %10 = arith.subf %7, %9 : vector<16x128xf32>
    %11 = arith.truncf %10 : vector<16x128xf32> to vector<16x128xbf16>
    %c0_9 = arith.constant 0 : index
    %c0_10 = arith.constant 0 : index
    %c0_11 = arith.constant 0 : index
    %12 = vector.load %arg2[%c0_9, %c0_10, %c0_11] : memref<3x128x128xbf16, #tpu.memory_space<vmem>>, vector<1x128x128xbf16>
    %13 = vector.shape_cast %12 : vector<1x128x128xbf16> to vector<128x128xbf16>
    %c0_12 = arith.constant 0 : index
    %c0_13 = arith.constant 0 : index
    %c0_14 = arith.constant 0 : index
    %14 = vector.load %arg3[%c0_12, %c0_13, %c0_14] : memref<3x128x128xbf16, #tpu.memory_space<vmem>>, vector<1x128x128xbf16>
    %15 = vector.shape_cast %14 : vector<1x128x128xbf16> to vector<128x128xbf16>
    %cst_15 = arith.constant dense<0.000000e+00> : vector<16x128xf32>
    %16 = tpu.matmul %8, %13, %cst_15 {dimension_numbers = #tpu.dot_dimension_numbers<[1], [0], [0], [1], [0, 0, 1, 1], [], []>} : vector<16x128xbf16>, vector<128x128xbf16>, vector<16x128xf32> -> vector<16x128xf32>
    %17 = arith.addf %6, %16 : vector<16x128xf32>
    %cst_16 = arith.constant dense<0.000000e+00> : vector<16x128xf32>
    %18 = tpu.matmul %11, %13, %cst_16 {dimension_numbers = #tpu.dot_dimension_numbers<[1], [0], [0], [1], [0, 0, 1, 1], [], []>} : vector<16x128xbf16>, vector<128x128xbf16>, vector<16x128xf32> -> vector<16x128xf32>
    %19 = arith.addf %17, %18 : vector<16x128xf32>
    %cst_17 = arith.constant dense<0.000000e+00> : vector<16x128xf32>
    %20 = tpu.matmul %8, %15, %cst_17 {dimension_numbers = #tpu.dot_dimension_numbers<[1], [0], [0], [1], [0, 0, 1, 1], [], []>} : vector<16x128xbf16>, vector<128x128xbf16>, vector<16x128xf32> -> vector<16x128xf32>
    %21 = arith.addf %19, %20 : vector<16x128xf32>
    %c1_18 = arith.constant 1 : index
    %c0_19 = arith.constant 0 : index
    %22 = vector.load %arg11[%c1_18, %c0_19] : memref<18x128xf32, #tpu.memory_space<vmem>>, vector<16x128xf32>
    %23 = arith.truncf %22 : vector<16x128xf32> to vector<16x128xbf16>
    %24 = arith.extf %23 : vector<16x128xbf16> to vector<16x128xf32>
    %25 = arith.subf %22, %24 : vector<16x128xf32>
    %26 = arith.truncf %25 : vector<16x128xf32> to vector<16x128xbf16>
    %c1_20 = arith.constant 1 : index
    %c0_21 = arith.constant 0 : index
    %c0_22 = arith.constant 0 : index
    %27 = vector.load %arg2[%c1_20, %c0_21, %c0_22] : memref<3x128x128xbf16, #tpu.memory_space<vmem>>, vector<1x128x128xbf16>
    %28 = vector.shape_cast %27 : vector<1x128x128xbf16> to vector<128x128xbf16>
    %c1_23 = arith.constant 1 : index
    %c0_24 = arith.constant 0 : index
    %c0_25 = arith.constant 0 : index
    %29 = vector.load %arg3[%c1_23, %c0_24, %c0_25] : memref<3x128x128xbf16, #tpu.memory_space<vmem>>, vector<1x128x128xbf16>
    %30 = vector.shape_cast %29 : vector<1x128x128xbf16> to vector<128x128xbf16>
    %cst_26 = arith.constant dense<0.000000e+00> : vector<16x128xf32>
    %31 = tpu.matmul %23, %28, %cst_26 {dimension_numbers = #tpu.dot_dimension_numbers<[1], [0], [0], [1], [0, 0, 1, 1], [], []>} : vector<16x128xbf16>, vector<128x128xbf16>, vector<16x128xf32> -> vector<16x128xf32>
    %32 = arith.addf %21, %31 : vector<16x128xf32>
    %cst_27 = arith.constant dense<0.000000e+00> : vector<16x128xf32>
    %33 = tpu.matmul %26, %28, %cst_27 {dimension_numbers = #tpu.dot_dimension_numbers<[1], [0], [0], [1], [0, 0, 1, 1], [], []>} : vector<16x128xbf16>, vector<128x128xbf16>, vector<16x128xf32> -> vector<16x128xf32>
    %34 = arith.addf %32, %33 : vector<16x128xf32>
    %cst_28 = arith.constant dense<0.000000e+00> : vector<16x128xf32>
    %35 = tpu.matmul %23, %30, %cst_28 {dimension_numbers = #tpu.dot_dimension_numbers<[1], [0], [0], [1], [0, 0, 1, 1], [], []>} : vector<16x128xbf16>, vector<128x128xbf16>, vector<16x128xf32> -> vector<16x128xf32>
    %36 = arith.addf %34, %35 : vector<16x128xf32>
    %c2 = arith.constant 2 : index
    %c0_29 = arith.constant 0 : index
    %37 = vector.load %arg11[%c2, %c0_29] : memref<18x128xf32, #tpu.memory_space<vmem>>, vector<16x128xf32>
    %38 = arith.truncf %37 : vector<16x128xf32> to vector<16x128xbf16>
    %39 = arith.extf %38 : vector<16x128xbf16> to vector<16x128xf32>
    %40 = arith.subf %37, %39 : vector<16x128xf32>
    %41 = arith.truncf %40 : vector<16x128xf32> to vector<16x128xbf16>
    %c2_30 = arith.constant 2 : index
    %c0_31 = arith.constant 0 : index
    %c0_32 = arith.constant 0 : index
    %42 = vector.load %arg2[%c2_30, %c0_31, %c0_32] : memref<3x128x128xbf16, #tpu.memory_space<vmem>>, vector<1x128x128xbf16>
    %43 = vector.shape_cast %42 : vector<1x128x128xbf16> to vector<128x128xbf16>
    %c2_33 = arith.constant 2 : index
    %c0_34 = arith.constant 0 : index
    %c0_35 = arith.constant 0 : index
    %44 = vector.load %arg3[%c2_33, %c0_34, %c0_35] : memref<3x128x128xbf16, #tpu.memory_space<vmem>>, vector<1x128x128xbf16>
    %45 = vector.shape_cast %44 : vector<1x128x128xbf16> to vector<128x128xbf16>
    %cst_36 = arith.constant dense<0.000000e+00> : vector<16x128xf32>
    %46 = tpu.matmul %38, %43, %cst_36 {dimension_numbers = #tpu.dot_dimension_numbers<[1], [0], [0], [1], [0, 0, 1, 1], [], []>} : vector<16x128xbf16>, vector<128x128xbf16>, vector<16x128xf32> -> vector<16x128xf32>
    %47 = arith.addf %36, %46 : vector<16x128xf32>
    %cst_37 = arith.constant dense<0.000000e+00> : vector<16x128xf32>
    %48 = tpu.matmul %41, %43, %cst_37 {dimension_numbers = #tpu.dot_dimension_numbers<[1], [0], [0], [1], [0, 0, 1, 1], [], []>} : vector<16x128xbf16>, vector<128x128xbf16>, vector<16x128xf32> -> vector<16x128xf32>
    %49 = arith.addf %47, %48 : vector<16x128xf32>
    %cst_38 = arith.constant dense<0.000000e+00> : vector<16x128xf32>
    %50 = tpu.matmul %38, %45, %cst_38 {dimension_numbers = #tpu.dot_dimension_numbers<[1], [0], [0], [1], [0, 0, 1, 1], [], []>} : vector<16x128xbf16>, vector<128x128xbf16>, vector<16x128xf32> -> vector<16x128xf32>
    %51 = arith.addf %49, %50 : vector<16x128xf32>
    %c0_39 = arith.constant 0 : index
    %c0_40 = arith.constant 0 : index
    %52 = vector.load %arg4[%c0_39, %c0_40] : memref<1x128xf32, #tpu.memory_space<vmem>>, vector<1x128xf32>
    %53 = vector.broadcast %52 : vector<1x128xf32> to vector<16x128xf32>
    %54 = arith.mulf %51, %53 : vector<16x128xf32>
    %c0_41 = arith.constant 0 : index
    %c0_42 = arith.constant 0 : index
    %55 = vector.load %arg5[%c0_41, %c0_42] : memref<1x128xf32, #tpu.memory_space<vmem>>, vector<1x128xf32>
    %56 = vector.broadcast %55 : vector<1x128xf32> to vector<16x128xf32>
    %57 = arith.addf %54, %56 : vector<16x128xf32>
    %cst_43 = arith.constant 0.000000e+00 : f32
    %58 = vector.broadcast %cst_43 : f32 to vector<16x128xf32>
    %59 = arith.maximumf %57, %58 : vector<16x128xf32>
    %c1_44 = arith.constant 1 : index
    %c0_45 = arith.constant 0 : index
    %60 = vector.load %arg11[%c1_44, %c0_45] : memref<18x128xf32, #tpu.memory_space<vmem>>, vector<16x128xf32>
    tpu.vector_store %arg11[%c1_44, %c0_45], %59 {strides = array<i32>} : memref<18x128xf32, #tpu.memory_space<vmem>>, vector<16x128xf32>,
    %cst_46 = arith.constant 0.000000e+00 : f32
    %61 = vector.broadcast %cst_46 : f32 to vector<16x128xf32>
    %c0_47 = arith.constant 0 : index
    %c0_48 = arith.constant 0 : index
    %62 = vector.load %arg11[%c0_47, %c0_48] : memref<18x128xf32, #tpu.memory_space<vmem>>, vector<16x128xf32>
    %63 = arith.truncf %62 : vector<16x128xf32> to vector<16x128xbf16>
    %64 = arith.extf %63 : vector<16x128xbf16> to vector<16x128xf32>
    %65 = arith.subf %62, %64 : vector<16x128xf32>
    %66 = arith.truncf %65 : vector<16x128xf32> to vector<16x128xbf16>
    %c0_49 = arith.constant 0 : index
    %c0_50 = arith.constant 0 : index
    %c0_51 = arith.constant 0 : index
    %67 = vector.load %arg6[%c0_49, %c0_50, %c0_51] : memref<3x128x128xbf16, #tpu.memory_space<vmem>>, vector<1x128x128xbf16>
    %68 = vector.shape_cast %67 : vector<1x128x128xbf16> to vector<128x128xbf16>
    %c0_52 = arith.constant 0 : index
    %c0_53 = arith.constant 0 : index
    %c0_54 = arith.constant 0 : index
    %69 = vector.load %arg7[%c0_52, %c0_53, %c0_54] : memref<3x128x128xbf16, #tpu.memory_space<vmem>>, vector<1x128x128xbf16>
    %70 = vector.shape_cast %69 : vector<1x128x128xbf16> to vector<128x128xbf16>
    %cst_55 = arith.constant dense<0.000000e+00> : vector<16x128xf32>
    %71 = tpu.matmul %63, %68, %cst_55 {dimension_numbers = #tpu.dot_dimension_numbers<[1], [0], [0], [1], [0, 0, 1, 1], [], []>} : vector<16x128xbf16>, vector<128x128xbf16>, vector<16x128xf32> -> vector<16x128xf32>
    %72 = arith.addf %61, %71 : vector<16x128xf32>
    %cst_56 = arith.constant dense<0.000000e+00> : vector<16x128xf32>
    %73 = tpu.matmul %66, %68, %cst_56 {dimension_numbers = #tpu.dot_dimension_numbers<[1], [0], [0], [1], [0, 0, 1, 1], [], []>} : vector<16x128xbf16>, vector<128x128xbf16>, vector<16x128xf32> -> vector<16x128xf32>
    %74 = arith.addf %72, %73 : vector<16x128xf32>
    %cst_57 = arith.constant dense<0.000000e+00> : vector<16x128xf32>
    %75 = tpu.matmul %63, %70, %cst_57 {dimension_numbers = #tpu.dot_dimension_numbers<[1], [0], [0], [1], [0, 0, 1, 1], [], []>} : vector<16x128xbf16>, vector<128x128xbf16>, vector<16x128xf32> -> vector<16x128xf32>
    %76 = arith.addf %74, %75 : vector<16x128xf32>
    %c1_58 = arith.constant 1 : index
    %c0_59 = arith.constant 0 : index
    %77 = vector.load %arg11[%c1_58, %c0_59] : memref<18x128xf32, #tpu.memory_space<vmem>>, vector<16x128xf32>
    %78 = arith.truncf %77 : vector<16x128xf32> to vector<16x128xbf16>
    %79 = arith.extf %78 : vector<16x128xbf16> to vector<16x128xf32>
    %80 = arith.subf %77, %79 : vector<16x128xf32>
    %81 = arith.truncf %80 : vector<16x128xf32> to vector<16x128xbf16>
    %c1_60 = arith.constant 1 : index
    %c0_61 = arith.constant 0 : index
    %c0_62 = arith.constant 0 : index
    %82 = vector.load %arg6[%c1_60, %c0_61, %c0_62] : memref<3x128x128xbf16, #tpu.memory_space<vmem>>, vector<1x128x128xbf16>
    %83 = vector.shape_cast %82 : vector<1x128x128xbf16> to vector<128x128xbf16>
    %c1_63 = arith.constant 1 : index
    %c0_64 = arith.constant 0 : index
    %c0_65 = arith.constant 0 : index
    %84 = vector.load %arg7[%c1_63, %c0_64, %c0_65] : memref<3x128x128xbf16, #tpu.memory_space<vmem>>, vector<1x128x128xbf16>
    %85 = vector.shape_cast %84 : vector<1x128x128xbf16> to vector<128x128xbf16>
    %cst_66 = arith.constant dense<0.000000e+00> : vector<16x128xf32>
    %86 = tpu.matmul %78, %83, %cst_66 {dimension_numbers = #tpu.dot_dimension_numbers<[1], [0], [0], [1], [0, 0, 1, 1], [], []>} : vector<16x128xbf16>, vector<128x128xbf16>, vector<16x128xf32> -> vector<16x128xf32>
    %87 = arith.addf %76, %86 : vector<16x128xf32>
    %cst_67 = arith.constant dense<0.000000e+00> : vector<16x128xf32>
    %88 = tpu.matmul %81, %83, %cst_67 {dimension_numbers = #tpu.dot_dimension_numbers<[1], [0], [0], [1], [0, 0, 1, 1], [], []>} : vector<16x128xbf16>, vector<128x128xbf16>, vector<16x128xf32> -> vector<16x128xf32>
    %89 = arith.addf %87, %88 : vector<16x128xf32>
    %cst_68 = arith.constant dense<0.000000e+00> : vector<16x128xf32>
    %90 = tpu.matmul %78, %85, %cst_68 {dimension_numbers = #tpu.dot_dimension_numbers<[1], [0], [0], [1], [0, 0, 1, 1], [], []>} : vector<16x128xbf16>, vector<128x128xbf16>, vector<16x128xf32> -> vector<16x128xf32>
    %91 = arith.addf %89, %90 : vector<16x128xf32>
    %c2_69 = arith.constant 2 : index
    %c0_70 = arith.constant 0 : index
    %92 = vector.load %arg11[%c2_69, %c0_70] : memref<18x128xf32, #tpu.memory_space<vmem>>, vector<16x128xf32>
    %93 = arith.truncf %92 : vector<16x128xf32> to vector<16x128xbf16>
    %94 = arith.extf %93 : vector<16x128xbf16> to vector<16x128xf32>
    %95 = arith.subf %92, %94 : vector<16x128xf32>
    %96 = arith.truncf %95 : vector<16x128xf32> to vector<16x128xbf16>
    %c2_71 = arith.constant 2 : index
    %c0_72 = arith.constant 0 : index
    %c0_73 = arith.constant 0 : index
    %97 = vector.load %arg6[%c2_71, %c0_72, %c0_73] : memref<3x128x128xbf16, #tpu.memory_space<vmem>>, vector<1x128x128xbf16>
    %98 = vector.shape_cast %97 : vector<1x128x128xbf16> to vector<128x128xbf16>
    %c2_74 = arith.constant 2 : index
    %c0_75 = arith.constant 0 : index
    %c0_76 = arith.constant 0 : index
    %99 = vector.load %arg7[%c2_74, %c0_75, %c0_76] : memref<3x128x128xbf16, #tpu.memory_space<vmem>>, vector<1x128x128xbf16>
    %100 = vector.shape_cast %99 : vector<1x128x128xbf16> to vector<128x128xbf16>
    %cst_77 = arith.constant dense<0.000000e+00> : vector<16x128xf32>
    %101 = tpu.matmul %93, %98, %cst_77 {dimension_numbers = #tpu.dot_dimension_numbers<[1], [0], [0], [1], [0, 0, 1, 1], [], []>} : vector<16x128xbf16>, vector<128x128xbf16>, vector<16x128xf32> -> vector<16x128xf32>
    %102 = arith.addf %91, %101 : vector<16x128xf32>
    %cst_78 = arith.constant dense<0.000000e+00> : vector<16x128xf32>
    %103 = tpu.matmul %96, %98, %cst_78 {dimension_numbers = #tpu.dot_dimension_numbers<[1], [0], [0], [1], [0, 0, 1, 1], [], []>} : vector<16x128xbf16>, vector<128x128xbf16>, vector<16x128xf32> -> vector<16x128xf32>
    %104 = arith.addf %102, %103 : vector<16x128xf32>
    %cst_79 = arith.constant dense<0.000000e+00> : vector<16x128xf32>
    %105 = tpu.matmul %93, %100, %cst_79 {dimension_numbers = #tpu.dot_dimension_numbers<[1], [0], [0], [1], [0, 0, 1, 1], [], []>} : vector<16x128xbf16>, vector<128x128xbf16>, vector<16x128xf32> -> vector<16x128xf32>
    %106 = arith.addf %104, %105 : vector<16x128xf32>
    %c0_80 = arith.constant 0 : index
    %c0_81 = arith.constant 0 : index
    %107 = vector.load %arg8[%c0_80, %c0_81] : memref<1x128xf32, #tpu.memory_space<vmem>>, vector<1x128xf32>
    %108 = vector.broadcast %107 : vector<1x128xf32> to vector<16x128xf32>
    %109 = arith.mulf %106, %108 : vector<16x128xf32>
    %c0_82 = arith.constant 0 : index
    %c0_83 = arith.constant 0 : index
    %110 = vector.load %arg9[%c0_82, %c0_83] : memref<1x128xf32, #tpu.memory_space<vmem>>, vector<1x128xf32>
    %111 = vector.broadcast %110 : vector<1x128xf32> to vector<16x128xf32>
    %112 = arith.addf %109, %111 : vector<16x128xf32>
    %113 = arith.addf %112, %1 : vector<16x128xf32>
    %cst_84 = arith.constant 0.000000e+00 : f32
    %114 = vector.broadcast %cst_84 : f32 to vector<16x128xf32>
    %115 = arith.maximumf %113, %114 : vector<16x128xf32>
    %c0_85 = arith.constant 0 : index
    %c0_86 = arith.constant 0 : index
    %c0_87 = arith.constant 0 : index
    %116 = vector.load %arg10[%c0_85, %c0_86, %c0_87] : memref<1x16x128xf32, #tpu.memory_space<vmem>>, vector<1x16x128xf32>
    %117 = vector.shape_cast %116 : vector<1x16x128xf32> to vector<16x128xf32>
    %118 = vector.shape_cast %115 : vector<16x128xf32> to vector<1x16x128xf32>
    tpu.vector_store %arg10[%c0_85, %c0_86, %c0_87], %118 {strides = array<i32>} : memref<1x16x128xf32, #tpu.memory_space<vmem>>, vector<1x16x128xf32>,
    return
  }
  func.func @transform_0(%arg0: i32) -> (i32, i32, i32) {
    %c0_i32 = arith.constant 0 : i32
    %c0_i32_0 = arith.constant 0 : i32
    %c0_i32_1 = arith.constant 0 : i32
    return %arg0, %c0_i32, %c0_i32_0 : i32, i32, i32
  }
  func.func @transform_1(%arg0: i32) -> (i32, i32, i32) {
    %c0_i32 = arith.constant 0 : i32
    %c0_i32_0 = arith.constant 0 : i32
    %c0_i32_1 = arith.constant 0 : i32
    %c0_i32_2 = arith.constant 0 : i32
    return %c0_i32, %c0_i32_0, %c0_i32_1 : i32, i32, i32
  }
  func.func @transform_2(%arg0: i32) -> (i32, i32, i32) {
    %c0_i32 = arith.constant 0 : i32
    %c0_i32_0 = arith.constant 0 : i32
    %c0_i32_1 = arith.constant 0 : i32
    %c0_i32_2 = arith.constant 0 : i32
    return %c0_i32, %c0_i32_0, %c0_i32_1 : i32, i32, i32
  }
  func.func @transform_3(%arg0: i32) -> (i32, i32) {
    %c0_i32 = arith.constant 0 : i32
    %c0_i32_0 = arith.constant 0 : i32
    %c0_i32_1 = arith.constant 0 : i32
    return %c0_i32, %c0_i32_0 : i32, i32
  }
  func.func @transform_4(%arg0: i32) -> (i32, i32) {
    %c0_i32 = arith.constant 0 : i32
    %c0_i32_0 = arith.constant 0 : i32
    %c0_i32_1 = arith.constant 0 : i32
    return %c0_i32, %c0_i32_0 : i32, i32
  }
  func.func @transform_5(%arg0: i32) -> (i32, i32, i32) {
    %c0_i32 = arith.constant 0 : i32
    %c0_i32_0 = arith.constant 0 : i32
    %c0_i32_1 = arith.constant 0 : i32
    %c0_i32_2 = arith.constant 0 : i32
    return %c0_i32, %c0_i32_0, %c0_i32_1 : i32, i32, i32
  }
  func.func @transform_6(%arg0: i32) -> (i32, i32, i32) {
    %c0_i32 = arith.constant 0 : i32
    %c0_i32_0 = arith.constant 0 : i32
    %c0_i32_1 = arith.constant 0 : i32
    %c0_i32_2 = arith.constant 0 : i32
    return %c0_i32, %c0_i32_0, %c0_i32_1 : i32, i32, i32
  }
  func.func @transform_7(%arg0: i32) -> (i32, i32) {
    %c0_i32 = arith.constant 0 : i32
    %c0_i32_0 = arith.constant 0 : i32
    %c0_i32_1 = arith.constant 0 : i32
    return %c0_i32, %c0_i32_0 : i32, i32
  }
  func.func @transform_8(%arg0: i32) -> (i32, i32) {
    %c0_i32 = arith.constant 0 : i32
    %c0_i32_0 = arith.constant 0 : i32
    %c0_i32_1 = arith.constant 0 : i32
    return %c0_i32, %c0_i32_0 : i32, i32
  }
  func.func @transform_9(%arg0: i32) -> (i32, i32, i32) {
    %c0_i32 = arith.constant 0 : i32
    %c0_i32_0 = arith.constant 0 : i32
    %c0_i32_1 = arith.constant 0 : i32
    return %arg0, %c0_i32, %c0_i32_0 : i32, i32, i32
  }
}

</mosaic_0001>

<bundles_post_ra>
// kernel: tpu_custom_call.1
= control target key start
LH: loop header
LB: loop body
LE: loop exit
PB: predicated region body
PF: predicated region fallthrough
CT: control target
= control target key end

     0   :  { %s3882_s0 = inlined_call_operand.hbm [shape: f32[2,16,128], index: 0, kind: input, shape index: {}]   ;;  %s3883_s1 = inlined_call_operand.hbm [shape: bf16[3,128,128], index: 1, kind: input, shape index: {}]   ;;  %s3884_s2 = inlined_call_operand.hbm [shape: bf16[3,128,128], index: 2, kind: input, shape index: {}]   ;;  %s3885_s3 = inlined_call_operand.vmem [shape: f32[1,128], index: 3, kind: input, shape index: {}]   ;;  %s3886_s4 = inlined_call_operand.vmem [shape: f32[1,128], index: 4, kind: input, shape index: {}]   ;;  %s3887_s5 = inlined_call_operand.hbm [shape: bf16[3,128,128], index: 5, kind: input, shape index: {}]   ;;  %s3888_s6 = inlined_call_operand.hbm [shape: bf16[3,128,128], index: 6, kind: input, shape index: {}]   ;;  %s3889_s7 = inlined_call_operand.vmem [shape: f32[1,128], index: 7, kind: input, shape index: {}]   ;;  %s3890_s8 = inlined_call_operand.vmem [shape: f32[1,128], index: 8, kind: input, shape index: {}]   ;;  %s3891_s9 = inlined_call_operand.hbm [shape: f32[2,16,128], index: 9, kind: output, shape index: {}]  }
   0x1   :  { %3898 = sst [smem:[#allocation19_spill]] %s3891_s9 }
   0x2   :  { %14 = vsyncpa [#allocation4], 0 }
   0x3   :  { %16 = vsyncpa [#allocation4 + $0x1], 0 }
   0x4   :  { %17 = vsyncpa [#allocation7], 0 }
   0x5   :  { %18 = vsyncpa [#allocation10], 0 }
   0x6   :  { %19 = vsyncpa [#allocation5], 0 }
   0x7   :  { %21 = vsyncpa [#allocation5 + $0x1], 0  ;;  %s3360_s30 = smov 0   ;;  %s3362_s10 = smov 0  }
   0x8   :  { %s3364_s11 = smov 0   ;;  %s3366_s12 = smov 0  }
   0x9 LB: > { %3899 = sst [smem:[#allocation17_spill]] %s3282_s30  ;;  %s3381_s13 = sadd.s32 4294967295, %s3294_s12   ;;  %s3294_s12 = sphi %s3366_s12, %s3923_s12   ;;  %s3290_s11 = sphi %s3364_s11, %s3922_s11   ;;  %s3286_s10 = sphi %s3362_s10, %s3921_s10   ;;  %s3282_s30 = sphi %s3360_s30, %s3920_s30  }
   0xa   : > { %s2177_s14 = sadd.s32 4294967294, %s3294_s12   ;;  %p47_p0 = scmp.ne.s32.totalorder %s3286_s10, %s3282_s30 }
   0xb   : > { %p3892_p1 = scmp.eq.s32.totalorder %s3381_s13, 0  ;;  %p245_p3 = scmp.eq.s32.totalorder %s2177_s14, 1 }
   0xc   : > { %p2178_p5 = scmp.ge.s32.totalorder %s3294_s12, 1  ;;  %p252_p7 = scmp.lt.s32.totalorder %s3294_s12, 3 }
   0xd   : > { %p3390_p4 = por %p3892_p1, %p47_p0  ;;  %p3395_p6 = por %p245_p3, %p47_p0 }
   0xe   : > { %p3400_p8 = pnand %p2178_p5, %p252_p7  ;;  %s3296_s18 = smov [#allocation6]  }
   0xf   : > { %s3900_s15 = scalar_select %p3390_p4, 1, 0 }
  0x10   : > { %s3901_s16 = scalar_select %p3395_p6, 1, 0 }
  0x11   : > { %s3903_s17 = scalar_select %p3400_p8, 1, 0 }
  0x12   : > { %3902 = sst [smem:[#allocation18_spill]] %s3901_s16  ;;  %s264_s19 = sshll.u32 %s3296_s18, 4  ;;  %s3404_s19 = int_to_ptr.vmem [resolvable:$true] %s264_s19 }
  0x13   : > { %p2907_p9 = pneg %p3400_p8  ;;  %s3297_s21 = smov [#allocation9]  }
  0x14   : > { %s296_s22 = sshll.u32 %s3297_s21, 4  ;;  %s3298_s23 = smov [#allocation8]   ;;  %s3415_s22 = int_to_ptr.vmem [resolvable:$true] %s296_s22 }
  0x15   : > { %p3411_p11 = pnand %p2907_p9, %p3892_p1  ;;  %s3417_s24 = sshll.u32 %s3298_s23, 4  ;;  %s278_s24 = int_to_ptr.vmem [resolvable:$true] %s3417_s24 }
  0x16   : > { %s3078_s27 = scalar_lea.hbm %s3883_s1, 3072 }
  0x17   : > { %p3079_p12 = scmp.ne.s32.totalorder %s3883_s1, %s3078_s27  ;;  %p3427_p13 = pneg %p3411_p11 }
  0x18   : > { %p3085_p5 = scmp.lt.u32.totalorder %s3078_s27, %s3883_s1 }
  0x19   : > { %p3081_p0 = pnand %p3427_p13, %p3079_p12 }
  0x1b   : > { %p3082_p3 = pneg %p3081_p0 }
  0x1d   : > { %p3087_p7 = pnand %p3085_p5, %p3082_p3 }
  0x1f   : > { %3090 = shalt.err (!%p3087_p7)
}
  0x20   : > { %s3091_s23 = scalar_lea.vmem %s3404_s19, 3072  ;;  %p3099_p2 = scmp.lt.s32.totalorder %s3404_s19, %s3404_s19 }
  0x21   : > { %p3092_p9 = scmp.ne.s32.totalorder %s3404_s19, %s3091_s23  ;;  %p3100_p6 = scmp.lt.s32.totalorder %s3091_s23, %s3091_s23 }
  0x23   : > { %p3094_p10 = pnand %p3092_p9, %p3427_p13  ;;  %p3101_p12 = por %p3100_p6, %p3099_p2 }
  0x25   : > { %p3095_p1 = pneg %p3094_p10 }
  0x27   : > { %p3102_p0 = pnand %p3101_p12, %p3095_p1 }
  0x29   : > { %3105 = shalt.err (!%p3102_p0)
}
  0x2a   : > { %s3299_s25 = smov 64   ;;  %s3300_s26 = smov 4  }
  0x2b   : > { %2910 = dma.hbm_to_vmem [thread:$0]  (!%p3411_p11), %s3883_s1, 3072, %s3404_s19, [#allocation7], %s3299_s25, %s3299_s25, %s3300_s26  }
  0x2c   : > { %s3106_s21 = scalar_lea.hbm %s3887_s5, 3072 }
  0x2d   : > { %p3107_p1 = scmp.ne.s32.totalorder %s3887_s5, %s3106_s21  ;;  %p3113_p10 = scmp.lt.u32.totalorder %s3106_s21, %s3887_s5 }
  0x2f   : > { %p3109_p2 = pnand %p3107_p1, %p3427_p13 }
  0x31   : > { %p3110_p6 = pneg %p3109_p2 }
  0x33   : > { %p3115_p3 = pnand %p3113_p10, %p3110_p6 }
  0x35   : > { %3118 = shalt.err (!%p3115_p3)
}
  0x36   : > { %s3119_s19 = scalar_lea.vmem %s3415_s22, 3072  ;;  %p3127_p12 = scmp.lt.s32.totalorder %s3415_s22, %s3415_s22 }
  0x37   : > { %p3120_p5 = scmp.ne.s32.totalorder %s3415_s22, %s3119_s19  ;;  %p3128_p0 = scmp.lt.s32.totalorder %s3119_s19, %s3119_s19 }
  0x39   : > { %p3122_p7 = pnand %p3120_p5, %p3427_p13  ;;  %p3129_p1 = por %p3128_p0, %p3127_p12 }
  0x3b   : > { %p3123_p9 = pneg %p3122_p7 }
  0x3d   : > { %p3130_p2 = pnand %p3129_p1, %p3123_p9 }
  0x3f   : > { %3133 = shalt.err (!%p3130_p2)
}
  0x40   : > { %2916 = dma.hbm_to_vmem [thread:$0]  (!%p3411_p11), %s3887_s5, 3072, %s3415_s22, [#allocation10], %s3299_s25, %s3299_s25, %s3300_s26  }
  0x41   : > { %s3134_s28 = scalar_lea.hbm %s3884_s2, 3072 }
  0x42   : > { %p3135_p6 = scmp.ne.s32.totalorder %s3884_s2, %s3134_s28  ;;  %p3141_p5 = scmp.lt.u32.totalorder %s3134_s28, %s3884_s2 }
  0x44   : > { %p3137_p10 = pnand %p3135_p6, %p3427_p13 }
  0x46   : > { %p3138_p3 = pneg %p3137_p10 }
  0x48   : > { %p3143_p7 = pnand %p3141_p5, %p3138_p3 }
  0x4a   : > { %3146 = shalt.err (!%p3143_p7)
}
  0x4b   : > { %s3147_s19 = scalar_lea.vmem %s278_s24, 3072  ;;  %p3155_p1 = scmp.lt.s32.totalorder %s278_s24, %s278_s24 }
  0x4c   : > { %p3148_p9 = scmp.ne.s32.totalorder %s278_s24, %s3147_s19  ;;  %p3156_p2 = scmp.lt.s32.totalorder %s3147_s19, %s3147_s19 }
  0x4e   : > { %p3150_p12 = pnand %p3148_p9, %p3427_p13  ;;  %p3157_p4 = por %p3156_p2, %p3155_p1 }
  0x50   : > { %p3151_p0 = pneg %p3150_p12 }
  0x52   : > { %p3158_p8 = pnand %p3157_p4, %p3151_p0 }
  0x54   : > { %3161 = shalt.err (!%p3158_p8)
}
  0x55   : > { %2913 = dma.hbm_to_vmem [thread:$0]  (!%p3411_p11), %s3884_s2, 3072, %s278_s24, [#allocation7], %s3299_s25, %s3299_s25, %s3300_s26  }
  0x56   : > { %s3301_s30 = smov [#allocation11]   ;;  %s3162_s29 = scalar_lea.hbm %s3888_s6, 3072 }
  0x57   : > { %s309_s16 = sshll.u32 %s3301_s30, 4  ;;  %p3163_p4 = scmp.ne.s32.totalorder %s3888_s6, %s3162_s29  ;;  %s310_s16 = int_to_ptr.vmem [resolvable:$true] %s309_s16 }
  0x58   : > { %p3169_p10 = scmp.lt.u32.totalorder %s3162_s29, %s3888_s6 }
  0x59   : > { %p3165_p8 = pnand %p3163_p4, %p3427_p13 }
  0x5b   : > { %p3166_p6 = pneg %p3165_p8 }
  0x5d   : > { %p3171_p3 = pnand %p3169_p10, %p3166_p6 }
  0x5f   : > { %3174 = shalt.err (!%p3171_p3)
}
  0x60   : > { %s3175_s24 = scalar_lea.vmem %s310_s16, 3072  ;;  %p3183_p12 = scmp.lt.s32.totalorder %s310_s16, %s310_s16 }
  0x61   : > { %p3176_p5 = scmp.ne.s32.totalorder %s310_s16, %s3175_s24  ;;  %p3184_p0 = scmp.lt.s32.totalorder %s3175_s24, %s3175_s24 }
  0x63   : > { %p3178_p7 = pnand %p3176_p5, %p3427_p13  ;;  %p3185_p1 = por %p3184_p0, %p3183_p12 }
  0x65   : > { %p3179_p9 = pneg %p3178_p7 }
  0x67   : > { %p3186_p2 = pnand %p3185_p1, %p3179_p9 }
  0x69   : > { %3189 = shalt.err (!%p3186_p2)
}
  0x6a   : > { %2919 = dma.hbm_to_vmem [thread:$0]  (!%p3411_p11), %s3888_s6, 3072, %s310_s16, [#allocation10], %s3299_s25, %s3299_s25, %s3300_s26  }
  0x6b   : > { %s3521_s14 = sadd.s32 1, %s3294_s12   ;;  %s34_s20 = sadd.s32 1, %s3290_s11 }
  0x6c   : > { %s31_s30 = ssub.s32 %s3294_s12, %s3521_s14  ;;  %p41_p13 = scmp.ne.s32.totalorder %s3290_s11, %s3286_s10 }
  0x6d   : > { %p32_p4 = scmp.eq.s32.totalorder %s31_s30, 0  ;;  %p42_p8 = scmp.eq.s32.totalorder %s3294_s12, 0 }
  0x6e   : > { %p3906_p6 = scmp.eq.s32.totalorder %s3381_s13, 1  ;;  %p2932_p3 = scmp.lt.s32.totalorder %s3294_s12, 2 }
  0x6f   : > { %s3537_s28 = scalar_select %p32_p4, %s3290_s11, %s34_s20  }
  0x70   : > { %p3531_p10 = por %p3906_p6, %p41_p13  ;;  %p43_p5 = por %p42_p8, %p41_p13 }
  0x71   : > { %s329_s29 = sand.u32 1, %s3290_s11   ;;  %s2299_s25 = sshll.u32 %s3294_s12, 8 }
  0x72   : > { %s2184_s18 = sshll.u32 %s329_s29, 4  ;;  %s3544_s21 = scalar_lea.hbm %s3882_s0, %s2299_s25 }
  0x73   : > { %s333_s23 = scalar_lea.vmem [#allocation3], %s2184_s18  ;;  %p3548_p11 = pnand %p2932_p3, %p43_p5 }
  0x74   : > { %s340_s19 = sshll.u32 %s333_s23, 4  ;;  %s3552_s22 = scalar_lea.sflag [#allocation4], %s329_s29  ;;  %s3546_s19 = int_to_ptr.vmem [resolvable:$true] %s340_s19 }
  0x75   : > { %s3190_s9 = scalar_lea.hbm %s3544_s21, 256  ;;  %p3192_p9 = pneg %p3548_p11 }
  0x76   : > { %p3191_p7 = scmp.ne.s32.totalorder %s3544_s21, %s3190_s9  ;;  %s3195_s18 = scalar_lea.hbm %s3882_s0, 512 }
  0x77   : > { %p3196_p1 = scmp.lt.u32.totalorder %s3544_s21, %s3882_s0  ;;  %p3197_p2 = scmp.lt.u32.totalorder %s3195_s18, %s3190_s9 }
  0x78   : > { %p3193_p12 = pnand %p3192_p9, %p3191_p7  ;;  %p3199_p4 = scmp.lt.u32.totalorder %s3190_s9, %s3544_s21 }
  0x79   : > { %p3198_p13 = por %p3197_p2, %p3196_p1 }
  0x7a   : > { %p3194_p0 = pneg %p3193_p12 }
  0x7b   : > { %p3200_p8 = por %p3199_p4, %p3198_p13 }
  0x7d   : > { %p3201_p6 = pnand %p3200_p8, %p3194_p0 }
  0x7f   : > { %3204 = shalt.err (!%p3201_p6)
}
  0x80   : > { %s3205_s29 = scalar_lea.vmem %s3546_s19, 256  ;;  %s3302_s16 = smov [#allocation3]  }
  0x81   : > { %p3206_p3 = scmp.ne.s32.totalorder %s3546_s19, %s3205_s29  ;;  %s3210_s23 = sshll.u32 %s3302_s16, 4  ;;  %s3211_s23 = int_to_ptr.vmem [resolvable:$false] %s3210_s23 }
  0x82   : > { %s3212_s20 = scalar_lea.vmem %s3211_s23, 512  ;;  %p3213_p12 = scmp.lt.s32.totalorder %s3546_s19, %s3211_s23 }
  0x83   : > { %p3208_p5 = pnand %p3206_p3, %p3192_p9  ;;  %p3214_p1 = scmp.lt.s32.totalorder %s3212_s20, %s3205_s29 }
  0x85   : > { %p3209_p7 = pneg %p3208_p5  ;;  %p3215_p2 = por %p3214_p1, %p3213_p12 }
  0x87   : > { %p3216_p13 = pnand %p3215_p2, %p3209_p7 }
  0x89   : > { %3219 = shalt.err (!%p3216_p13)
}
  0x8a   : > { %s3303_s9 = smov 128   ;;  %s3304_s30 = smov 8  }
  0x8b   : > { %2923 = dma.hbm_to_vmem [thread:$0]  (!%p3548_p11), %s3544_s21, 256, %s3546_s19, %s3552_s22, %s3303_s9, %s3303_s9, %s3304_s30  }
  0x8c   : > { %p3909_p9 = scmp.ne.s32.totalorder %s3903_s17, 0 }
  0x8d   : > { %s3583_s18 = sand.u32 (!%p3909_p9), 1, %s3286_s10   ;;  %p3910_p0 = scmp.ne.s32.totalorder (!%p3909_p9), %s3900_s15, 0 }
  0x8e   : > { %352 = sbr.rel (%p3909_p9) target bundleno = 1176 (0x498), region = 56  ;;  %s2188_s25 = sshll.u32 (!%p3909_p9), %s3583_s18, 4 }
  0x8f   : > { %s355_s26 = scalar_lea.sflag (!%p3909_p9), [#allocation4], %s3583_s18  ;;  %s358_s29 = scalar_lea.vmem (!%p3909_p9), [#allocation3], %s2188_s25 }
  0x95   : > { %3265 = dma.done.wait (%p3910_p0), %s355_s26, 256  }
  0x96   : > { %3267 = vsyncadd (%p3910_p0), %s355_s26, 4294967040  ;;  %p3911_p11 = scmp.eq.s32.totalorder %s3381_s13, 0 }
  0x98   : > { %3269 = dma.done.wait (%p3911_p11), [#allocation7], 6144   ;;  %p3912_p4 = pmov %p3911_p11 }
  0x9a   : > { %3271 = vsyncadd (%p3912_p4), [#allocation7], 4294961152  ;;  %p3913_p8 = pmov %p3912_p4 }
  0x9b   : > { %p3914_p6 = pmov %p3912_p4 }
  0x9c   : > { %3273 = dma.done.wait (%p3913_p8), [#allocation10], 6144  }
  0x9d   : > { %3275 = vsyncadd (%p3914_p6), [#allocation10], 4294961152  ;;  %v3305_v0 = vmov 0.0   ;;  %vm3306_vm0 = vmmov 0   ;;  %v2982_v1 = vld [vmem:[#allocation6] sm:$0xff]   ;;  %v2983_v2 = vld [vmem:[#allocation6 + $0x8] sm:$0xff]  }
  0x9e   : > { %2463 = vmatprep.subr.bf16.mxu0 %v3305_v0  ;;  %412 = vst [vmem:[#allocation2] sm:$0x1] %v3305_v0  ;;  %413 = vst [vmem:[#allocation2 + $0x11] sm:$0x1] %v3305_v0  ;;  %2479 = vmatprep.mubr.msk.bf16.mxu0 %vm3306_vm0, %v3305_v0  ;;  %v2984_v3 = vld [vmem:[#allocation6 + $0x10] sm:$0xff]   ;;  %v3613_v5 = vld [vmem:[%s358_s29 + $0x8] sm:$0xff] }
  0x9f   : > { %2643 = vmatprep.subr.bf16.mxu1 %v3305_v0  ;;  %2659 = vmatprep.mubr.msk.bf16.mxu1 %vm3306_vm0, %v3305_v0  ;;  %v3611_v4 = vld [vmem:[%s358_s29] sm:$0xff]  ;;  %415 = vst [vmem:[#allocation2 + $0x9] sm:$0xff] %v3613_v5  ;;  %v2985_v6 = vld [vmem:[#allocation6 + $0x18] sm:$0xff]   ;;  %v2987_v11 = vld [vmem:[#allocation6 + $0x28] sm:$0xff]   ;;  %s408_s20 = scalar_lea.vmem [#allocation12], %s2188_s25  ;;  %s2300_s30 = sshll.u32 %s3381_s13, 8 }
  0xa0   : > { %2464 = vmatpush3.bf16.msra.mxu0 %v2982_v1  ;;  %414 = vst [vmem:[#allocation2 + $0x1] sm:$0xff] %v3611_v4  ;;  %v2986_v7 = vld [vmem:[#allocation6 + $0x20] sm:$0xff]   ;;  %v2988_v14 = vld [vmem:[#allocation6 + $0x30] sm:$0xff]   ;;  %v2989_v15 = vld [vmem:[#allocation6 + $0x38] sm:$0xff]   ;;  %v679_v35 = vpack.c.bf16 %v3613_v5, %v3611_v4  ;;  %s2066_s9 = sshll.u32 %s408_s20, 4  ;;  %s3915_s15 = sld [smem:[#allocation19_spill]]  ;;  %s3832_s9 = int_to_ptr.vmem [resolvable:$true] %s2066_s9 }
  0xa1   : > { %2465 = vmatprep.subr.bf16.mxu0 %v3305_v0  ;;  %v2990_v19 = vld [vmem:[#allocation8] sm:$0xff]   ;;  %v2991_v20 = vld [vmem:[#allocation8 + $0x8] sm:$0xff]   ;;  %v2992_v21 = vld [vmem:[#allocation8 + $0x10] sm:$0xff]   ;;  %s2053_s25 = scalar_lea.sflag [#allocation5], %s3583_s18  ;;  %s3220_s21 = scalar_lea.vmem %s3832_s9, 256 }
  0xa2   : > { %v2993_v22 = vld [vmem:[#allocation8 + $0x18] sm:$0xff]   ;;  %v2994_v23 = vld [vmem:[#allocation8 + $0x20] sm:$0xff]   ;;  %v2995_v24 = vld [vmem:[#allocation8 + $0x28] sm:$0xff]   ;;  %v680_v36 = vunpack.c.l.bf16 %v679_v35  ;;  %v681_v37 = vunpack.c.h.bf16 %v679_v35  ;;  %p3221_p3 = scmp.ne.s32.totalorder %s3832_s9, %s3220_s21  ;;  %s3307_s13 = smov [#allocation12]  }
  0xa3   : > { %v2996_v25 = vld [vmem:[#allocation8 + $0x30] sm:$0xff]   ;;  %v2997_v26 = vld [vmem:[#allocation8 + $0x38] sm:$0xff]   ;;  %v2998_v27 = vld [vmem:[#allocation6 + $0x40] sm:$0xff]   ;;  %s3224_s19 = sshll.u32 %s3307_s13, 4  ;;  %s3225_s19 = int_to_ptr.vmem [resolvable:$false] %s3224_s19 }
  0xa4   : > { %2466 = vmatpush3.bf16.msra.mxu0 %v2983_v2  ;;  %v2999_v28 = vld [vmem:[#allocation6 + $0x48] sm:$0xff]   ;;  %v3000_v29 = vld [vmem:[#allocation6 + $0x50] sm:$0xff]   ;;  %v3001_v30 = vld [vmem:[#allocation6 + $0x58] sm:$0xff]   ;;  %v682_v38 = vsub.f32 %v3611_v4, %v680_v36  ;;  %v683_v39 = vsub.f32 %v3613_v5, %v681_v37  ;;  %p3222_p5 = pnand %p3221_p3, %p3531_p10  ;;  %s3226_s24 = scalar_lea.vmem %s3225_s19, 512 }
  0xa5   : > { %2467 = vmatprep.subr.bf16.mxu0 %v3305_v0  ;;  %v3002_v31 = vld [vmem:[#allocation6 + $0x60] sm:$0xff]   ;;  %v3003_v32 = vld [vmem:[#allocation6 + $0x68] sm:$0xff]   ;;  %v3004_v33 = vld [vmem:[#allocation6 + $0x70] sm:$0xff]   ;;  %p3227_p12 = scmp.lt.s32.totalorder %s3832_s9, %s3225_s19  ;;  %p3228_p1 = scmp.lt.s32.totalorder %s3226_s24, %s3220_s21 }
  0xa6   : > { %v3005_v34 = vld [vmem:[#allocation6 + $0x78] sm:$0xff]   ;;  %v684_v40 = vpack.c.bf16 %v683_v39, %v682_v38  ;;  %v3006_v41 = vld [vmem:[#allocation8 + $0x40] sm:$0xff]   ;;  %v3007_v43 = vld [vmem:[#allocation8 + $0x48] sm:$0xff]   ;;  %s3838_s17 = scalar_lea.hbm %s3915_s15, %s2300_s30  ;;  %p3223_p7 = pneg %p3222_p5 }
  0xa7   : > { %v416_v8 = vld [vmem:[#allocation2] sm:$0xff]  ;;  %v417_v9 = vld [vmem:[#allocation2 + $0x8] sm:$0xff]  ;;  %v3667_v42 = vld [vmem:[#allocation9] sm:$0xff]   ;;  %p3229_p2 = por %p3228_p1, %p3227_p12 }
  0xa8   : > { %2468 = vmatpush3.bf16.msra.mxu0 %v2984_v3  ;;  %v418_v10 = vpack.c.bf16 %v417_v9, %v416_v8  ;;  %2644 = vmatpush3.bf16.msra.mxu1 %v3667_v42  ;;  %v3673_v44 = vld [vmem:[#allocation9 + $0x8] sm:$0xff]   ;;  %v3008_v45 = vld [vmem:[#allocation8 + $0x50] sm:$0xff]   ;;  %v3009_v46 = vld [vmem:[#allocation8 + $0x58] sm:$0xff]  }
  0xa9   : > { %2469 = vmatprep.subr.bf16.mxu0 %v3305_v0  ;;  %2645 = vmatprep.subr.bf16.mxu1 %v3305_v0  ;;  %v3010_v47 = vld [vmem:[#allocation8 + $0x60] sm:$0xff]   ;;  %v3011_v48 = vld [vmem:[#allocation8 + $0x68] sm:$0xff]   ;;  %v3012_v49 = vld [vmem:[#allocation8 + $0x70] sm:$0xff]   ;;  %p3230_p13 = pnand %p3229_p2, %p3223_p7 }
  0xaa   : > { %v419_v12 = vunpack.c.l.bf16 %v418_v10  ;;  %v420_v13 = vunpack.c.h.bf16 %v418_v10  ;;  %v3013_v50 = vld [vmem:[#allocation8 + $0x78] sm:$0xff]   ;;  %v3014_v51 = vld [vmem:[#allocation6 + $0x80] sm:$0xff]   ;;  %v3015_v52 = vld [vmem:[#allocation6 + $0x88] sm:$0xff]  }
  0xab   : > { %v3016_v53 = vld [vmem:[#allocation6 + $0x90] sm:$0xff]   ;;  %v3017_v54 = vld [vmem:[#allocation6 + $0x98] sm:$0xff]   ;;  %v3018_v55 = vld [vmem:[#allocation6 + $0xa0] sm:$0xff]  }
  0xac   : > { %2470 = vmatpush3.bf16.msra.mxu0 %v2985_v6  ;;  %v421_v16 = vsub.f32 %v416_v8, %v419_v12  ;;  %v422_v17 = vsub.f32 %v417_v9, %v420_v13  ;;  %2646 = vmatpush3.bf16.msra.mxu1 %v3673_v44  ;;  %v3019_v56 = vld [vmem:[#allocation6 + $0xa8] sm:$0xff]   ;;  %v3020_v57 = vld [vmem:[#allocation6 + $0xb0] sm:$0xff]   ;;  %v3021_v58 = vld [vmem:[#allocation6 + $0xb8] sm:$0xff]  }
  0xad   : > { %2471 = vmatprep.subr.bf16.mxu0 %v3305_v0  ;;  %2647 = vmatprep.subr.bf16.mxu1 %v3305_v0  ;;  %v944_v59 = vld [vmem:[#allocation2 + $0x2] sm:$0xff]  ;;  %v945_v60 = vld [vmem:[#allocation2 + $0xa] sm:$0xff] }
  0xae   : > { %v423_v18 = vpack.c.bf16 %v422_v17, %v421_v16  ;;  %v946_v61 = vpack.c.bf16 %v945_v60, %v944_v59  ;;  %v3024_v8 = vld [vmem:[#allocation8 + $0x90] sm:$0xff]   ;;  %v3025_v9 = vld [vmem:[#allocation8 + $0x98] sm:$0xff]   ;;  %v3034_v16 = vld [vmem:[#allocation9 + $0x20] sm:$0xff]  }
  0xaf   : > { %v3028_v12 = vld [vmem:[#allocation8 + $0xb0] sm:$0xff]   ;;  %v3029_v13 = vld [vmem:[#allocation8 + $0xb8] sm:$0xff]   ;;  %v3035_v17 = vld [vmem:[#allocation9 + $0x28] sm:$0xff]  }
  0xb0   : > { %2472 = vmatpush3.bf16.msra.mxu0 %v2986_v7  ;;  %v947_v62 = vunpack.c.l.bf16 %v946_v61  ;;  %v948_v63 = vunpack.c.h.bf16 %v946_v61 }
  0xb1   : > { %2473 = vmatprep.subr.bf16.mxu0 %v3305_v0 }
  0xb4   : > { %2474 = vmatpush3.bf16.msra.mxu0 %v2987_v11 }
  0xb5   : > { %2475 = vmatprep.subr.bf16.mxu0 %v3305_v0 }
  0xb8   : > { %2476 = vmatpush3.bf16.msra.mxu0 %v2988_v14 }
  0xb9   : > { %2477 = vmatprep.subr.bf16.mxu0 %v3305_v0 }
  0xbc   : > { %2478 = vmatpush3.bf16.msra.mxu0 %v2989_v15 }
  0xbd   : > { %2483 = vmatprep.subr.bf16.mxu0 %v3305_v0 }
  0xbf   : > { %2480 = vmatmul.mubr.bf16.vlgmr.msra.gmra.mrb[0].mxu0 %v423_v18  ;;  %v3036_v18 = vld [vmem:[#allocation9 + $0x30] sm:$0xff]  }
  0xc0   : > { %2484 = vmatpush3.bf16.msra.mxu0 %v2982_v1  ;;  %2499 = vmatprep.mubr.msk.bf16.mxu0 %vm3306_vm0, %v3305_v0  ;;  %v949_v1 = vsub.f32 %v944_v59, %v947_v62  ;;  %v3051_v59 = vld [vmem:[#allocation9 + $0x68] sm:$0xff]   ;;  %v3054_v62 = vld [vmem:[#allocation11 + $0x40] sm:$0xff]  }
  0xc1   : > { %2485 = vmatprep.subr.bf16.mxu0 %v3305_v0 }
  0xc4   : > { %2486 = vmatpush3.bf16.msra.mxu0 %v2983_v2  ;;  %v950_v2 = vsub.f32 %v945_v60, %v948_v63  ;;  %v3052_v60 = vld [vmem:[#allocation9 + $0x70] sm:$0xff]   ;;  %v3055_v63 = vld [vmem:[#allocation11 + $0x48] sm:$0xff]  }
  0xc5   : > { %2487 = vmatprep.subr.bf16.mxu0 %v3305_v0 }
  0xc8   : > { %2488 = vmatpush3.bf16.msra.mxu0 %v2984_v3  ;;  %v951_v3 = vpack.c.bf16 %v950_v2, %v949_v1  ;;  %v3056_v1 = vld [vmem:[#allocation11 + $0x50] sm:$0xff]   ;;  %v3057_v2 = vld [vmem:[#allocation11 + $0x58] sm:$0xff]  }
  0xc9   : > { %2489 = vmatprep.subr.bf16.mxu0 %v3305_v0 }
  0xcc   : > { %2490 = vmatpush3.bf16.msra.mxu0 %v2985_v6  ;;  %v3022_v6 = vld [vmem:[#allocation8 + $0x80] sm:$0xff]  }
  0xcd   : > { %2491 = vmatprep.subr.bf16.mxu0 %v3305_v0 }
  0xd0   : > { %2492 = vmatpush3.bf16.msra.mxu0 %v2986_v7  ;;  %v3023_v7 = vld [vmem:[#allocation8 + $0x88] sm:$0xff]  }
  0xd1   : > { %2493 = vmatprep.subr.bf16.mxu0 %v3305_v0 }
  0xd4   : > { %2494 = vmatpush3.bf16.msra.mxu0 %v2987_v11  ;;  %v3027_v11 = vld [vmem:[#allocation8 + $0xa8] sm:$0xff]  }
  0xd5   : > { %2495 = vmatprep.subr.bf16.mxu0 %v3305_v0 }
  0xd8   : > { %2496 = vmatpush3.bf16.msra.mxu0 %v2988_v14  ;;  %v3032_v14 = vld [vmem:[#allocation9 + $0x10] sm:$0xff]  }
  0xd9   : > { %2497 = vmatprep.subr.bf16.mxu0 %v3305_v0  ;;  %2648 = vmatpush3.bf16.msra.mxu1 %v3032_v14 }
  0xda   : > { %2649 = vmatprep.subr.bf16.mxu1 %v3305_v0 }
  0xdc   : > { %2498 = vmatpush3.bf16.msra.mxu0 %v2989_v15  ;;  %v3033_v15 = vld [vmem:[#allocation9 + $0x18] sm:$0xff]  }
  0xdd   : > { %2503 = vmatprep.subr.bf16.mxu0 %v3305_v0  ;;  %2650 = vmatpush3.bf16.msra.mxu1 %v3033_v15 }
  0xde   : > { %2651 = vmatprep.subr.bf16.mxu1 %v3305_v0 }
  0xdf   : > { %2500 = vmatmul.mubr.bf16.vlgmr.msra.gmra.mrb[0].mxu0 %v418_v10 }
  0xe0   : > { %2504 = vmatpush3.bf16.msra.mxu0 %v2990_v19  ;;  %2519 = vmatprep.mubr.msk.bf16.mxu0 %vm3306_vm0, %v3305_v0  ;;  %v3037_v19 = vld [vmem:[#allocation9 + $0x38] sm:$0xff]  }
  0xe1   : > { %2505 = vmatprep.subr.bf16.mxu0 %v3305_v0  ;;  %2652 = vmatpush3.bf16.msra.mxu1 %v3034_v16 }
  0xe2   : > { %2653 = vmatprep.subr.bf16.mxu1 %v3305_v0 }
  0xe4   : > { %2506 = vmatpush3.bf16.msra.mxu0 %v2991_v20  ;;  %v2242_v20 = vld [vmem:[%s3885_s3] ss:$0 sm:$0xff] }
  0xe5   : > { %2507 = vmatprep.subr.bf16.mxu0 %v3305_v0  ;;  %2654 = vmatpush3.bf16.msra.mxu1 %v3035_v17 }
  0xe6   : > { %2655 = vmatprep.subr.bf16.mxu1 %v3305_v0 }
  0xe8   : > { %2508 = vmatpush3.bf16.msra.mxu0 %v2992_v21 }
  0xe9   : > { %2509 = vmatprep.subr.bf16.mxu0 %v3305_v0  ;;  %2656 = vmatpush3.bf16.msra.mxu1 %v3036_v18 }
  0xea   : > { %2657 = vmatprep.subr.bf16.mxu1 %v3305_v0 }
  0xec   : > { %2510 = vmatpush3.bf16.msra.mxu0 %v2993_v22  ;;  %v2243_v22 = vld [vmem:[%s3886_s4] ss:$0 sm:$0xff] }
  0xed   : > { %2511 = vmatprep.subr.bf16.mxu0 %v3305_v0  ;;  %2658 = vmatpush3.bf16.msra.mxu1 %v3037_v19 }
  0xee   : > { %2663 = vmatprep.subr.bf16.mxu1 %v3305_v0 }
  0xf0   : > { %2512 = vmatpush3.bf16.msra.mxu0 %v2994_v23 }
  0xf1   : > { %2513 = vmatprep.subr.bf16.mxu0 %v3305_v0 }
  0xf4   : > { %2514 = vmatpush3.bf16.msra.mxu0 %v2995_v24 }
  0xf5   : > { %2515 = vmatprep.subr.bf16.mxu0 %v3305_v0 }
  0xf8   : > { %2516 = vmatpush3.bf16.msra.mxu0 %v2996_v25 }
  0xf9   : > { %2517 = vmatprep.subr.bf16.mxu0 %v3305_v0 }
  0xfc   : > { %2518 = vmatpush3.bf16.msra.mxu0 %v2997_v26 }
  0xfd   : > { %2523 = vmatprep.subr.bf16.mxu0 %v3305_v0 }
  0xff   : > { %2520 = vmatmul.mubr.bf16.vlgmr.msra.gmra.mrb[0].mxu0 %v418_v10  ;;  %v3026_v10 = vld [vmem:[#allocation8 + $0xa0] sm:$0xff]  }
 0x100   : > { %2524 = vmatpush3.bf16.msra.mxu0 %v2998_v27  ;;  %2539 = vmatprep.mubr.msk.bf16.mxu0 %vm3306_vm0, %v3305_v0 }
 0x101   : > { %2525 = vmatprep.subr.bf16.mxu0 %v3305_v0 }
 0x104   : > { %2526 = vmatpush3.bf16.msra.mxu0 %v2999_v28 }
 0x105   : > { %2527 = vmatprep.subr.bf16.mxu0 %v3305_v0 }
 0x108   : > { %2528 = vmatpush3.bf16.msra.mxu0 %v3000_v29 }
 0x109   : > { %2529 = vmatprep.subr.bf16.mxu0 %v3305_v0 }
 0x10c   : > { %2530 = vmatpush3.bf16.msra.mxu0 %v3001_v30 }
 0x10d   : > { %2531 = vmatprep.subr.bf16.mxu0 %v3305_v0 }
 0x110   : > { %2532 = vmatpush3.bf16.msra.mxu0 %v3002_v31 }
 0x111   : > { %2533 = vmatprep.subr.bf16.mxu0 %v3305_v0 }
 0x114   : > { %2534 = vmatpush3.bf16.msra.mxu0 %v3003_v32 }
 0x115   : > { %2535 = vmatprep.subr.bf16.mxu0 %v3305_v0 }
 0x118   : > { %2536 = vmatpush3.bf16.msra.mxu0 %v3004_v33 }
 0x119   : > { %2537 = vmatprep.subr.bf16.mxu0 %v3305_v0 }
 0x11c   : > { %2538 = vmatpush3.bf16.msra.mxu0 %v3005_v34 }
 0x11d   : > { %2543 = vmatprep.subr.bf16.mxu0 %v3305_v0 }
 0x11f   : > { %2540 = vmatmul.mubr.bf16.vlgmr.msra.gmra.mrb[0].mxu0 %v679_v35 }
 0x120   : > { %2544 = vmatpush3.bf16.msra.mxu0 %v2998_v27  ;;  %2559 = vmatprep.mubr.msk.bf16.mxu0 %vm3306_vm0, %v3305_v0 }
 0x121   : > { %2545 = vmatprep.subr.bf16.mxu0 %v3305_v0 }
 0x124   : > { %2546 = vmatpush3.bf16.msra.mxu0 %v2999_v28 }
 0x125   : > { %2547 = vmatprep.subr.bf16.mxu0 %v3305_v0 }
 0x128   : > { %2548 = vmatpush3.bf16.msra.mxu0 %v3000_v29 }
 0x129   : > { %2549 = vmatprep.subr.bf16.mxu0 %v3305_v0 }
 0x12c   : > { %2550 = vmatpush3.bf16.msra.mxu0 %v3001_v30 }
 0x12d   : > { %2551 = vmatprep.subr.bf16.mxu0 %v3305_v0 }
 0x130   : > { %2552 = vmatpush3.bf16.msra.mxu0 %v3002_v31 }
 0x131   : > { %2553 = vmatprep.subr.bf16.mxu0 %v3305_v0 }
 0x134   : > { %2554 = vmatpush3.bf16.msra.mxu0 %v3003_v32 }
 0x135   : > { %2555 = vmatprep.subr.bf16.mxu0 %v3305_v0 }
 0x138   : > { %2556 = vmatpush3.bf16.msra.mxu0 %v3004_v33 }
 0x139   : > { %2557 = vmatprep.subr.bf16.mxu0 %v3305_v0 }
 0x13c   : > { %2558 = vmatpush3.bf16.msra.mxu0 %v3005_v34 }
 0x13d   : > { %2563 = vmatprep.subr.bf16.mxu0 %v3305_v0 }
 0x13f   : > { %2560 = vmatmul.mubr.bf16.vlgmr.msra.gmra.mrb[0].mxu0 %v684_v40 }
 0x140   : > { %2564 = vmatpush3.bf16.msra.mxu0 %v3006_v41  ;;  %2579 = vmatprep.mubr.msk.bf16.mxu0 %vm3306_vm0, %v3305_v0 }
 0x141   : > { %2565 = vmatprep.subr.bf16.mxu0 %v3305_v0 }
 0x144   : > { %2566 = vmatpush3.bf16.msra.mxu0 %v3007_v43 }
 0x145   : > { %2567 = vmatprep.subr.bf16.mxu0 %v3305_v0 }
 0x148   : > { %2568 = vmatpush3.bf16.msra.mxu0 %v3008_v45 }
 0x149   : > { %2569 = vmatprep.subr.bf16.mxu0 %v3305_v0 }
 0x14c   : > { %2570 = vmatpush3.bf16.msra.mxu0 %v3009_v46 }
 0x14d   : > { %2571 = vmatprep.subr.bf16.mxu0 %v3305_v0 }
 0x150   : > { %2572 = vmatpush3.bf16.msra.mxu0 %v3010_v47 }
 0x151   : > { %2573 = vmatprep.subr.bf16.mxu0 %v3305_v0 }
 0x154   : > { %2574 = vmatpush3.bf16.msra.mxu0 %v3011_v48  ;;  %v3040_v48 = vld [vmem:[#allocation11 + $0x10] sm:$0xff]  }
 0x155   : > { %2575 = vmatprep.subr.bf16.mxu0 %v3305_v0 }
 0x158   : > { %2576 = vmatpush3.bf16.msra.mxu0 %v3012_v49  ;;  %v3041_v49 = vld [vmem:[#allocation11 + $0x18] sm:$0xff]  }
 0x159   : > { %2577 = vmatprep.subr.bf16.mxu0 %v3305_v0 }
 0x15c   : > { %2578 = vmatpush3.bf16.msra.mxu0 %v3013_v50  ;;  %v3042_v50 = vld [vmem:[#allocation11 + $0x20] sm:$0xff]  }
 0x15d   : > { %2583 = vmatprep.subr.bf16.mxu0 %v3305_v0 }
 0x15f   : > { %2580 = vmatmul.mubr.bf16.vlgmr.msra.gmra.mrb[0].mxu0 %v679_v35 }
 0x160   : > { %2584 = vmatpush3.bf16.msra.mxu0 %v3014_v51  ;;  %2599 = vmatprep.mubr.msk.bf16.mxu0 %vm3306_vm0, %v3305_v0 }
 0x161   : > { %2585 = vmatprep.subr.bf16.mxu0 %v3305_v0 }
 0x164   : > { %2586 = vmatpush3.bf16.msra.mxu0 %v3015_v52 }
 0x165   : > { %2587 = vmatprep.subr.bf16.mxu0 %v3305_v0 }
 0x168   : > { %2588 = vmatpush3.bf16.msra.mxu0 %v3016_v53 }
 0x169   : > { %2589 = vmatprep.subr.bf16.mxu0 %v3305_v0 }
 0x16c   : > { %2590 = vmatpush3.bf16.msra.mxu0 %v3017_v54 }
 0x16d   : > { %2591 = vmatprep.subr.bf16.mxu0 %v3305_v0 }
 0x170   : > { %2592 = vmatpush3.bf16.msra.mxu0 %v3018_v55 }
 0x171   : > { %2593 = vmatprep.subr.bf16.mxu0 %v3305_v0 }
 0x174   : > { %2594 = vmatpush3.bf16.msra.mxu0 %v3019_v56 }
 0x175   : > { %2595 = vmatprep.subr.bf16.mxu0 %v3305_v0 }
 0x178   : > { %2596 = vmatpush3.bf16.msra.mxu0 %v3020_v57 }
 0x179   : > { %2597 = vmatprep.subr.bf16.mxu0 %v3305_v0 }
 0x17c   : > { %2598 = vmatpush3.bf16.msra.mxu0 %v3021_v58 }
 0x17d   : > { %2603 = vmatprep.subr.bf16.mxu0 %v3305_v0 }
 0x17f   : > { %2600 = vmatmul.mubr.bf16.vlgmr.msra.gmra.mrb[0].mxu0 %v946_v61 }
 0x180   : > { %2604 = vmatpush3.bf16.msra.mxu0 %v3014_v51  ;;  %2619 = vmatprep.mubr.msk.bf16.mxu0 %vm3306_vm0, %v3305_v0  ;;  %v3043_v51 = vld [vmem:[#allocation11 + $0x28] sm:$0xff]  }
 0x181   : > { %2605 = vmatprep.subr.bf16.mxu0 %v3305_v0 }
 0x184   : > { %2606 = vmatpush3.bf16.msra.mxu0 %v3015_v52  ;;  %v3044_v52 = vld [vmem:[#allocation11 + $0x30] sm:$0xff]  }
 0x185   : > { %2607 = vmatprep.subr.bf16.mxu0 %v3305_v0 }
 0x188   : > { %2608 = vmatpush3.bf16.msra.mxu0 %v3016_v53  ;;  %v3045_v53 = vld [vmem:[#allocation11 + $0x38] sm:$0xff]  }
 0x189   : > { %2609 = vmatprep.subr.bf16.mxu0 %v3305_v0 }
 0x18c   : > { %2610 = vmatpush3.bf16.msra.mxu0 %v3017_v54  ;;  %v3046_v54 = vld [vmem:[#allocation9 + $0x40] sm:$0xff]  }
 0x18d   : > { %2611 = vmatprep.subr.bf16.mxu0 %v3305_v0 }
 0x190   : > { %2612 = vmatpush3.bf16.msra.mxu0 %v3018_v55  ;;  %v3047_v55 = vld [vmem:[#allocation9 + $0x48] sm:$0xff]  }
 0x191   : > { %2613 = vmatprep.subr.bf16.mxu0 %v3305_v0 }
 0x194   : > { %2614 = vmatpush3.bf16.msra.mxu0 %v3019_v56  ;;  %v3048_v56 = vld [vmem:[#allocation9 + $0x50] sm:$0xff]  }
 0x195   : > { %2615 = vmatprep.subr.bf16.mxu0 %v3305_v0 }
 0x198   : > { %2616 = vmatpush3.bf16.msra.mxu0 %v3020_v57  ;;  %v3049_v57 = vld [vmem:[#allocation9 + $0x58] sm:$0xff]  }
 0x199   : > { %2617 = vmatprep.subr.bf16.mxu0 %v3305_v0 }
 0x19c   : > { %2618 = vmatpush3.bf16.msra.mxu0 %v3021_v58  ;;  %v3050_v58 = vld [vmem:[#allocation9 + $0x60] sm:$0xff]  }
 0x19d   : > { %2623 = vmatprep.subr.bf16.mxu0 %v3305_v0 }
 0x19f   : > { %2620 = vmatmul.mubr.bf16.vlgmr.msra.gmra.mrb[0].mxu0 %v951_v3  ;;  %v3058_v3 = vld [vmem:[#allocation11 + $0x60] sm:$0xff]  }
 0x1a0   : > { %2624 = vmatpush3.bf16.msra.mxu0 %v3022_v6  ;;  %2639 = vmatprep.mubr.msk.bf16.mxu0 %vm3306_vm0, %v3305_v0  ;;  %v3059_v6 = vld [vmem:[#allocation11 + $0x68] sm:$0xff]  }
 0x1a1   : > { %2625 = vmatprep.subr.bf16.mxu0 %v3305_v0 }
 0x1a4   : > { %2626 = vmatpush3.bf16.msra.mxu0 %v3023_v7  ;;  %v3060_v7 = vld [vmem:[#allocation11 + $0x70] sm:$0xff]  }
 0x1a5   : > { %2627 = vmatprep.subr.bf16.mxu0 %v3305_v0 }
 0x1a8   : > { %2628 = vmatpush3.bf16.msra.mxu0 %v3024_v8  ;;  %v3061_v8 = vld [vmem:[#allocation11 + $0x78] sm:$0xff]  }
 0x1a9   : > { %2629 = vmatprep.subr.bf16.mxu0 %v3305_v0 }
 0x1ac   : > { %2630 = vmatpush3.bf16.msra.mxu0 %v3025_v9  ;;  %v3062_v9 = vld [vmem:[#allocation9 + $0x80] sm:$0xff]  }
 0x1ad   : > { %2631 = vmatprep.subr.bf16.mxu0 %v3305_v0 }
 0x1b0   : > { %2632 = vmatpush3.bf16.msra.mxu0 %v3026_v10  ;;  %v3063_v10 = vld [vmem:[#allocation9 + $0x88] sm:$0xff]  }
 0x1b1   : > { %2633 = vmatprep.subr.bf16.mxu0 %v3305_v0 }
 0x1b4   : > { %2634 = vmatpush3.bf16.msra.mxu0 %v3027_v11  ;;  %v3064_v11 = vld [vmem:[#allocation9 + $0x90] sm:$0xff]  }
 0x1b5   : > { %2635 = vmatprep.subr.bf16.mxu0 %v3305_v0 }
 0x1b8   : > { %2636 = vmatpush3.bf16.msra.mxu0 %v3028_v12  ;;  %v3065_v12 = vld [vmem:[#allocation9 + $0x98] sm:$0xff]  }
 0x1b9   : > { %2637 = vmatprep.subr.bf16.mxu0 %v3305_v0 }
 0x1bc   : > { %2638 = vmatpush3.bf16.msra.mxu0 %v3029_v13  ;;  %v3066_v13 = vld [vmem:[#allocation9 + $0xa0] sm:$0xff]  }
 0x1bf   : > { %2640 = vmatmul.mubr.bf16.vlgmr.msra.gmra.mrb[0].mxu0 %v946_v61  ;;  %v3053_v61 = vld [vmem:[#allocation9 + $0x78] sm:$0xff]  }
 0x292   : > { %v1202_v21 = vpop.f32.mrb[0].mxu0 }
 0x293   : > { %v1218_v23 = vmul.f32 %v2242_v20, %v1202_v21  ;;  %v2641_v24 = vpop.f32.mrb[1].mxu0 }
 0x294   : > { %v1205_v25 = vpop.f32.mrb[2].mxu0  ;;  %v3070_v24 = vld [vmem:[#allocation11 + $0x80] sm:$0xff]  }
 0x295   : > { %v1227_v26 = vadd.f32 %v2243_v22, %v1218_v23  ;;  %v1219_v27 = vmul.f32 %v2242_v20, %v1205_v25  ;;  %v2642_v28 = vpop.f32.mrb[3].mxu0 }
 0x296   : > { %v3073_v28 = vld [vmem:[#allocation11 + $0x98] sm:$0xff]  }
 0x297   : > { %v1229_v29 = vmax.f32 %v1227_v26, 0.0  ;;  %v1228_v30 = vadd.f32 %v2243_v22, %v1219_v27  ;;  %v3071_v26 = vld [vmem:[#allocation11 + $0x88] sm:$0xff]   ;;  %v3072_v27 = vld [vmem:[#allocation11 + $0x90] sm:$0xff]  }
 0x299   : > { %1231 = vst [vmem:[#allocation2 + $0x1] sm:$0xff] %v1229_v29  ;;  %v1230_v31 = vmax.f32 %v1228_v30, 0.0  ;;  %v3075_v30 = vld [vmem:[#allocation11 + $0xa8] sm:$0xff]  }
 0x29b   : > { %1232 = vst [vmem:[#allocation2 + $0x9] sm:$0xff] %v1230_v31  ;;  %v3726_v32 = vpack.c.bf16 %v1230_v31, %v1229_v29 }
 0x29d   : > { %v1497_v33 = vunpack.c.l.bf16 %v3726_v32  ;;  %v1498_v34 = vunpack.c.h.bf16 %v3726_v32 }
 0x29f   : > { %v3730_v35 = vsub.f32 %v1229_v29, %v1497_v33  ;;  %v3732_v36 = vsub.f32 %v1230_v31, %v1498_v34  ;;  %v3074_v29 = vld [vmem:[#allocation11 + $0xa0] sm:$0xff]   ;;  %v3076_v31 = vld [vmem:[#allocation11 + $0xb0] sm:$0xff]   ;;  %v2292_v33 = vld [vmem:[%s3889_s7] ss:$0 sm:$0xff] }
 0x2a0   : > { %v1233_v38 = vld [vmem:[#allocation2] sm:$0xff] }
 0x2a1   : > { %v1501_v37 = vpack.c.bf16 %v3732_v36, %v3730_v35  ;;  %v2293_v35 = vld [vmem:[%s3890_s8] ss:$0 sm:$0xff] }
 0x2a2   : > { %v1234_v39 = vld [vmem:[#allocation2 + $0x8] sm:$0xff] }
 0x2a3   : > { %v1235_v40 = vpack.c.bf16 %v1234_v39, %v1233_v38 }
 0x2a5   : > { %v1236_v41 = vunpack.c.l.bf16 %v1235_v40  ;;  %v1237_v43 = vunpack.c.h.bf16 %v1235_v40 }
 0x2a7   : > { %v1238_v45 = vsub.f32 %v1233_v38, %v1236_v41  ;;  %v1239_v46 = vsub.f32 %v1234_v39, %v1237_v43 }
 0x2a9   : > { %v1240_v47 = vpack.c.bf16 %v1239_v46, %v1238_v45 }
 0x2ab   : > { %2660 = vmatmul.mubr.bf16.vlgmr.msra.gmra.mrb[0].mxu1 %v1240_v47 }
 0x2ac   : > { %2664 = vmatpush3.bf16.msra.mxu1 %v3667_v42  ;;  %2679 = vmatprep.mubr.msk.bf16.mxu1 %vm3306_vm0, %v3305_v0  ;;  %v3038_v42 = vld [vmem:[#allocation11] sm:$0xff]  }
 0x2ad   : > { %2665 = vmatprep.subr.bf16.mxu1 %v3305_v0 }
 0x2b0   : > { %2666 = vmatpush3.bf16.msra.mxu1 %v3673_v44  ;;  %v3039_v44 = vld [vmem:[#allocation11 + $0x8] sm:$0xff]  }
 0x2b1   : > { %2667 = vmatprep.subr.bf16.mxu1 %v3305_v0 }
 0x2b4   : > { %2668 = vmatpush3.bf16.msra.mxu1 %v3032_v14  ;;  %v3067_v14 = vld [vmem:[#allocation9 + $0xa8] sm:$0xff]  }
 0x2b5   : > { %2669 = vmatprep.subr.bf16.mxu1 %v3305_v0 }
 0x2b8   : > { %2670 = vmatpush3.bf16.msra.mxu1 %v3033_v15  ;;  %v3068_v15 = vld [vmem:[#allocation9 + $0xb0] sm:$0xff]  }
 0x2b9   : > { %2671 = vmatprep.subr.bf16.mxu1 %v3305_v0 }
 0x2bc   : > { %2672 = vmatpush3.bf16.msra.mxu1 %v3034_v16  ;;  %v3069_v16 = vld [vmem:[#allocation9 + $0xb8] sm:$0xff]  }
 0x2bd   : > { %2673 = vmatprep.subr.bf16.mxu1 %v3305_v0 }
 0x2c0   : > { %2674 = vmatpush3.bf16.msra.mxu1 %v3035_v17  ;;  %v1761_v17 = vld [vmem:[#allocation2 + $0x2] sm:$0xff] }
 0x2c1   : > { %2675 = vmatprep.subr.bf16.mxu1 %v3305_v0 }
 0x2c4   : > { %2676 = vmatpush3.bf16.msra.mxu1 %v3036_v18  ;;  %v1762_v18 = vld [vmem:[#allocation2 + $0xa] sm:$0xff] }
 0x2c5   : > { %2677 = vmatprep.subr.bf16.mxu1 %v3305_v0 }
 0x2c8   : > { %2678 = vmatpush3.bf16.msra.mxu1 %v3037_v19  ;;  %v1763_v19 = vpack.c.bf16 %v1762_v18, %v1761_v17 }
 0x2c9   : > { %2683 = vmatprep.subr.bf16.mxu1 %v3305_v0 }
 0x2ca   : > { %v1764_v20 = vunpack.c.l.bf16 %v1763_v19  ;;  %v1765_v21 = vunpack.c.h.bf16 %v1763_v19 }
 0x2cb   : > { %2680 = vmatmul.mubr.bf16.vlgmr.msra.gmra.mrb[0].mxu1 %v1235_v40 }
 0x2cc   : > { %2684 = vmatpush3.bf16.msra.mxu1 %v3038_v42  ;;  %2699 = vmatprep.mubr.msk.bf16.mxu1 %vm3306_vm0, %v3305_v0  ;;  %v1766_v22 = vsub.f32 %v1761_v17, %v1764_v20  ;;  %v1767_v23 = vsub.f32 %v1762_v18, %v1765_v21 }
 0x2cd   : > { %2685 = vmatprep.subr.bf16.mxu1 %v3305_v0 }
 0x2ce   : > { %v1768_v25 = vpack.c.bf16 %v1767_v23, %v1766_v22 }
 0x2d0   : > { %2686 = vmatpush3.bf16.msra.mxu1 %v3039_v44 }
 0x2d1   : > { %2687 = vmatprep.subr.bf16.mxu1 %v3305_v0 }
 0x2d4   : > { %2688 = vmatpush3.bf16.msra.mxu1 %v3040_v48 }
 0x2d5   : > { %2689 = vmatprep.subr.bf16.mxu1 %v3305_v0 }
 0x2d8   : > { %2690 = vmatpush3.bf16.msra.mxu1 %v3041_v49 }
 0x2d9   : > { %2691 = vmatprep.subr.bf16.mxu1 %v3305_v0 }
 0x2dc   : > { %2692 = vmatpush3.bf16.msra.mxu1 %v3042_v50 }
 0x2dd   : > { %2693 = vmatprep.subr.bf16.mxu1 %v3305_v0 }
 0x2e0   : > { %2694 = vmatpush3.bf16.msra.mxu1 %v3043_v51 }
 0x2e1   : > { %2695 = vmatprep.subr.bf16.mxu1 %v3305_v0 }
 0x2e4   : > { %2696 = vmatpush3.bf16.msra.mxu1 %v3044_v52 }
 0x2e5   : > { %2697 = vmatprep.subr.bf16.mxu1 %v3305_v0 }
 0x2e8   : > { %2698 = vmatpush3.bf16.msra.mxu1 %v3045_v53 }
 0x2e9   : > { %2703 = vmatprep.subr.bf16.mxu1 %v3305_v0 }
 0x2eb   : > { %2700 = vmatmul.mubr.bf16.vlgmr.msra.gmra.mrb[0].mxu1 %v1235_v40 }
 0x2ec   : > { %2704 = vmatpush3.bf16.msra.mxu1 %v3046_v54  ;;  %2719 = vmatprep.mubr.msk.bf16.mxu1 %vm3306_vm0, %v3305_v0 }
 0x2ed   : > { %2705 = vmatprep.subr.bf16.mxu1 %v3305_v0 }
 0x2f0   : > { %2706 = vmatpush3.bf16.msra.mxu1 %v3047_v55 }
 0x2f1   : > { %2707 = vmatprep.subr.bf16.mxu1 %v3305_v0 }
 0x2f4   : > { %2708 = vmatpush3.bf16.msra.mxu1 %v3048_v56 }
 0x2f5   : > { %2709 = vmatprep.subr.bf16.mxu1 %v3305_v0 }
 0x2f8   : > { %2710 = vmatpush3.bf16.msra.mxu1 %v3049_v57 }
 0x2f9   : > { %2711 = vmatprep.subr.bf16.mxu1 %v3305_v0 }
 0x2fc   : > { %2712 = vmatpush3.bf16.msra.mxu1 %v3050_v58 }
 0x2fd   : > { %2713 = vmatprep.subr.bf16.mxu1 %v3305_v0 }
 0x300   : > { %2714 = vmatpush3.bf16.msra.mxu1 %v3051_v59 }
 0x301   : > { %2715 = vmatprep.subr.bf16.mxu1 %v3305_v0 }
 0x304   : > { %2716 = vmatpush3.bf16.msra.mxu1 %v3052_v60 }
 0x305   : > { %2717 = vmatprep.subr.bf16.mxu1 %v3305_v0 }
 0x308   : > { %2718 = vmatpush3.bf16.msra.mxu1 %v3053_v61 }
 0x309   : > { %2723 = vmatprep.subr.bf16.mxu1 %v3305_v0 }
 0x30b   : > { %2720 = vmatmul.mubr.bf16.vlgmr.msra.gmra.mrb[0].mxu1 %v3726_v32 }
 0x30c   : > { %2724 = vmatpush3.bf16.msra.mxu1 %v3046_v54  ;;  %2739 = vmatprep.mubr.msk.bf16.mxu1 %vm3306_vm0, %v3305_v0 }
 0x30d   : > { %2725 = vmatprep.subr.bf16.mxu1 %v3305_v0 }
 0x310   : > { %2726 = vmatpush3.bf16.msra.mxu1 %v3047_v55 }
 0x311   : > { %2727 = vmatprep.subr.bf16.mxu1 %v3305_v0 }
 0x314   : > { %2728 = vmatpush3.bf16.msra.mxu1 %v3048_v56 }
 0x315   : > { %2729 = vmatprep.subr.bf16.mxu1 %v3305_v0 }
 0x318   : > { %2730 = vmatpush3.bf16.msra.mxu1 %v3049_v57 }
 0x319   : > { %2731 = vmatprep.subr.bf16.mxu1 %v3305_v0 }
 0x31c   : > { %2732 = vmatpush3.bf16.msra.mxu1 %v3050_v58 }
 0x31d   : > { %2733 = vmatprep.subr.bf16.mxu1 %v3305_v0 }
 0x320   : > { %2734 = vmatpush3.bf16.msra.mxu1 %v3051_v59 }
 0x321   : > { %2735 = vmatprep.subr.bf16.mxu1 %v3305_v0 }
 0x324   : > { %2736 = vmatpush3.bf16.msra.mxu1 %v3052_v60 }
 0x325   : > { %2737 = vmatprep.subr.bf16.mxu1 %v3305_v0 }
 0x328   : > { %2738 = vmatpush3.bf16.msra.mxu1 %v3053_v61 }
 0x329   : > { %2743 = vmatprep.subr.bf16.mxu1 %v3305_v0 }
 0x32b   : > { %2740 = vmatmul.mubr.bf16.vlgmr.msra.gmra.mrb[0].mxu1 %v1501_v37 }
 0x32c   : > { %2744 = vmatpush3.bf16.msra.mxu1 %v3054_v62  ;;  %2759 = vmatprep.mubr.msk.bf16.mxu1 %vm3306_vm0, %v3305_v0 }
 0x32d   : > { %2745 = vmatprep.subr.bf16.mxu1 %v3305_v0 }
 0x330   : > { %2746 = vmatpush3.bf16.msra.mxu1 %v3055_v63 }
 0x331   : > { %2747 = vmatprep.subr.bf16.mxu1 %v3305_v0 }
 0x334   : > { %2748 = vmatpush3.bf16.msra.mxu1 %v3056_v1 }
 0x335   : > { %2749 = vmatprep.subr.bf16.mxu1 %v3305_v0 }
 0x338   : > { %2750 = vmatpush3.bf16.msra.mxu1 %v3057_v2 }
 0x339   : > { %2751 = vmatprep.subr.bf16.mxu1 %v3305_v0 }
 0x33c   : > { %2752 = vmatpush3.bf16.msra.mxu1 %v3058_v3 }
 0x33d   : > { %2753 = vmatprep.subr.bf16.mxu1 %v3305_v0 }
 0x340   : > { %2754 = vmatpush3.bf16.msra.mxu1 %v3059_v6 }
 0x341   : > { %2755 = vmatprep.subr.bf16.mxu1 %v3305_v0 }
 0x344   : > { %2756 = vmatpush3.bf16.msra.mxu1 %v3060_v7 }
 0x345   : > { %2757 = vmatprep.subr.bf16.mxu1 %v3305_v0 }
 0x348   : > { %2758 = vmatpush3.bf16.msra.mxu1 %v3061_v8 }
 0x349   : > { %2763 = vmatprep.subr.bf16.mxu1 %v3305_v0 }
 0x34b   : > { %2760 = vmatmul.mubr.bf16.vlgmr.msra.gmra.mrb[0].mxu1 %v3726_v32  ;;  %v3077_v32 = vld [vmem:[#allocation11 + $0xb8] sm:$0xff]  }
 0x34c   : > { %2764 = vmatpush3.bf16.msra.mxu1 %v3062_v9  ;;  %2779 = vmatprep.mubr.msk.bf16.mxu1 %vm3306_vm0, %v3305_v0 }
 0x34d   : > { %2765 = vmatprep.subr.bf16.mxu1 %v3305_v0 }
 0x350   : > { %2766 = vmatpush3.bf16.msra.mxu1 %v3063_v10 }
 0x351   : > { %2767 = vmatprep.subr.bf16.mxu1 %v3305_v0 }
 0x354   : > { %2768 = vmatpush3.bf16.msra.mxu1 %v3064_v11 }
 0x355   : > { %2769 = vmatprep.subr.bf16.mxu1 %v3305_v0 }
 0x358   : > { %2770 = vmatpush3.bf16.msra.mxu1 %v3065_v12 }
 0x359   : > { %2771 = vmatprep.subr.bf16.mxu1 %v3305_v0 }
 0x35c   : > { %2772 = vmatpush3.bf16.msra.mxu1 %v3066_v13 }
 0x35d   : > { %2773 = vmatprep.subr.bf16.mxu1 %v3305_v0 }
 0x360   : > { %2774 = vmatpush3.bf16.msra.mxu1 %v3067_v14 }
 0x361   : > { %2775 = vmatprep.subr.bf16.mxu1 %v3305_v0 }
 0x364   : > { %2776 = vmatpush3.bf16.msra.mxu1 %v3068_v15 }
 0x365   : > { %2777 = vmatprep.subr.bf16.mxu1 %v3305_v0 }
 0x368   : > { %2778 = vmatpush3.bf16.msra.mxu1 %v3069_v16 }
 0x369   : > { %2783 = vmatprep.subr.bf16.mxu1 %v3305_v0 }
 0x36b   : > { %2780 = vmatmul.mubr.bf16.vlgmr.msra.gmra.mrb[0].mxu1 %v1763_v19 }
 0x36c   : > { %2784 = vmatpush3.bf16.msra.mxu1 %v3062_v9  ;;  %2799 = vmatprep.mubr.msk.bf16.mxu1 %vm3306_vm0, %v3305_v0 }
 0x36d   : > { %2785 = vmatprep.subr.bf16.mxu1 %v3305_v0 }
 0x370   : > { %2786 = vmatpush3.bf16.msra.mxu1 %v3063_v10 }
 0x371   : > { %2787 = vmatprep.subr.bf16.mxu1 %v3305_v0 }
 0x374   : > { %2788 = vmatpush3.bf16.msra.mxu1 %v3064_v11 }
 0x375   : > { %2789 = vmatprep.subr.bf16.mxu1 %v3305_v0 }
 0x378   : > { %2790 = vmatpush3.bf16.msra.mxu1 %v3065_v12 }
 0x379   : > { %2791 = vmatprep.subr.bf16.mxu1 %v3305_v0 }
 0x37c   : > { %2792 = vmatpush3.bf16.msra.mxu1 %v3066_v13 }
 0x37d   : > { %2793 = vmatprep.subr.bf16.mxu1 %v3305_v0 }
 0x380   : > { %2794 = vmatpush3.bf16.msra.mxu1 %v3067_v14 }
 0x381   : > { %2795 = vmatprep.subr.bf16.mxu1 %v3305_v0 }
 0x384   : > { %2796 = vmatpush3.bf16.msra.mxu1 %v3068_v15 }
 0x385   : > { %2797 = vmatprep.subr.bf16.mxu1 %v3305_v0 }
 0x388   : > { %2798 = vmatpush3.bf16.msra.mxu1 %v3069_v16 }
 0x389   : > { %2803 = vmatprep.subr.bf16.mxu1 %v3305_v0 }
 0x38b   : > { %2800 = vmatmul.mubr.bf16.vlgmr.msra.gmra.mrb[0].mxu1 %v1768_v25 }
 0x38c   : > { %2804 = vmatpush3.bf16.msra.mxu1 %v3070_v24  ;;  %2819 = vmatprep.mubr.msk.bf16.mxu1 %vm3306_vm0, %v3305_v0 }
 0x38d   : > { %2805 = vmatprep.subr.bf16.mxu1 %v3305_v0 }
 0x390   : > { %2806 = vmatpush3.bf16.msra.mxu1 %v3071_v26 }
 0x391   : > { %2807 = vmatprep.subr.bf16.mxu1 %v3305_v0 }
 0x394   : > { %2808 = vmatpush3.bf16.msra.mxu1 %v3072_v27 }
 0x395   : > { %2809 = vmatprep.subr.bf16.mxu1 %v3305_v0 }
 0x398   : > { %2810 = vmatpush3.bf16.msra.mxu1 %v3073_v28 }
 0x399   : > { %2811 = vmatprep.subr.bf16.mxu1 %v3305_v0 }
 0x39c   : > { %2812 = vmatpush3.bf16.msra.mxu1 %v3074_v29 }
 0x39d   : > { %2813 = vmatprep.subr.bf16.mxu1 %v3305_v0 }
 0x3a0   : > { %2814 = vmatpush3.bf16.msra.mxu1 %v3075_v30 }
 0x3a1   : > { %2815 = vmatprep.subr.bf16.mxu1 %v3305_v0 }
 0x3a4   : > { %2816 = vmatpush3.bf16.msra.mxu1 %v3076_v31 }
 0x3a5   : > { %2817 = vmatprep.subr.bf16.mxu1 %v3305_v0 }
 0x3a8   : > { %2818 = vmatpush3.bf16.msra.mxu1 %v3077_v32 }
 0x3ab   : > { %2820 = vmatmul.mubr.bf16.vlgmr.msra.gmra.mrb[0].mxu1 %v1763_v19 }
 0x47e   : > { %v2019_v34 = vpop.f32.mrb[0].mxu1 }
 0x47f   : > { %v2035_v36 = vmul.f32 %v2292_v33, %v2019_v34  ;;  %v2821_v37 = vpop.f32.mrb[1].mxu1 }
 0x480   : > { %v2022_v38 = vpop.f32.mrb[2].mxu1 }
 0x481   : > { %v2044_v39 = vadd.f32 %v2293_v35, %v2035_v36  ;;  %v2036_v40 = vmul.f32 %v2292_v33, %v2022_v38  ;;  %v2822_v41 = vpop.f32.mrb[3].mxu1 }
 0x483   : > { %v2046_v0 = vadd.f32 %v2044_v39, %v3611_v4  ;;  %v2045_v43 = vadd.f32 %v2293_v35, %v2036_v40 }
 0x485   : > { %v2048_v45 = vmax.f32 %v2046_v0, 0.0  ;;  %v2047_v46 = vadd.f32 %v2045_v43, %v3613_v5 }
 0x487   : > { %2050 = vst [vmem:[%s408_s20] sm:$0xff] %v2048_v45  ;;  %v2049_v47 = vmax.f32 %v2047_v46, 0.0 }
 0x489   : > { %2051 = vst [vmem:[%s408_s20 + $0x8] sm:$0xff] %v2049_v47 }
 0x48a   : > { %3233 = shalt.err (!%p3230_p13)
}
 0x48b   : > { %s3234_s22 = scalar_lea.hbm %s3838_s17, 256  ;;  %s3238_s20 = scalar_lea.hbm %s3915_s15, 512 }
 0x48c   : > { %p3235_p9 = scmp.ne.s32.totalorder %s3838_s17, %s3234_s22  ;;  %p3239_p4 = scmp.lt.u32.totalorder %s3838_s17, %s3915_s15 }
 0x48d   : > { %p3240_p8 = scmp.lt.u32.totalorder %s3238_s20, %s3234_s22  ;;  %p3242_p3 = scmp.lt.u32.totalorder %s3234_s22, %s3838_s17 }
 0x48e   : > { %p3236_p0 = pnand %p3235_p9, %p3531_p10 }
 0x48f   : > { %p3241_p6 = por %p3240_p8, %p3239_p4 }
 0x490   : > { %p3237_p11 = pneg %p3236_p0 }
 0x491   : > { %p3243_p5 = por %p3242_p3, %p3241_p6 }
 0x493   : > { %p3244_p7 = pnand %p3243_p5, %p3237_p11 }
 0x495   : > { %3247 = shalt.err (!%p3244_p7)
}
 0x496   : > { %s3308_s29 = smov 128   ;;  %s3309_s21 = smov 8  }
 0x497   : > { %2905 = dma.vmem_to_hbm [thread:$0]  (%p3531_p10), %s3832_s9, 256, %s3838_s17, %s2053_s25, %s3308_s29, %s3308_s29, %s3309_s21  }
 0x498 PF: > { %s3916_s13 = sld [smem:[#allocation17_spill]]  ;;  %s3917_s19 = sld [smem:[#allocation18_spill]] }
 0x499   : > { %p3919_p1 = scmp.ge.s32.totalorder %s3294_s12, 2 }
 0x49e   : > { %s2081_s24 = sand.u32 1, %s3916_s13   ;;  %p3918_p12 = scmp.ne.s32.totalorder %s3917_s19, 0 }
 0x49f   : > { %s2082_s22 = scalar_lea.sflag [#allocation5], %s2081_s24 }
 0x4a0   : > { %p2925_p2 = pnand %p3919_p1, %p3918_p12 }
 0x4a2   : > { %3277 = dma.done.wait (!%p2925_p2), %s2082_s22, 256  }
 0x4a3   : > { %3279 = vsyncadd (!%p2925_p2), %s2082_s22, 4294967040  ;;  %p24_p13 = scmp.ge.s32.totalorder %s3521_s14, 4   ;;  %s3920_s30 = smov %s3286_s10 }
 0x4a4   : > { %s3921_s10 = smov %s3290_s11  ;;  %s3922_s11 = smov %s3537_s28 }
 0x4a5   : > { %s3923_s12 = smov %s3521_s14  ;;  %26 = sbr.rel (!%p24_p13) target bundleno = 9 (0x9), region = 125 }
 0x4ac   :  { %2087 = vsyncpa [#allocation4], 1 }
 0x4ad   :  { %2089 = vsyncpa [#allocation4 + $0x1], 1 }
 0x4ae   :  { %2090 = vsyncpa [#allocation7], 1 }
 0x4af   :  { %2091 = vsyncpa [#allocation10], 1 }
 0x4b0   :  { %2092 = vsyncpa [#allocation5], 1 }
 0x4b1   :  { %2094 = vsyncpa [#allocation5 + $0x1], 1 }

</bundles_post_ra>
